<compile_context>
chip_gen: v5e
topology: v5e:2x2
jax: 0.10.0
libtpu: 0.0.40
codegen_flags: <defaults>
</compile_context>

<pallas_src>
import jax
import jax.numpy as jnp
from jax.experimental import pallas as pl
from jax.experimental.pallas import tpu as pltpu

BN_EPS = 1e-5


def _cross_neuron_kernel(xc_ref, w1t_ref, b1_ref, w2t_ref, b2_ref,
                         gamma_ref, beta_ref, out_ref):
    # xc_ref block: (Bblk, C, S); parameter blocks are full (untiled) and stay
    # VMEM-resident across grid steps (constant index_map).
    bblk, c, s = xc_ref.shape
    xc3 = xc_ref[...]                                        # (Bblk, C, S)

    # --- 1x1-conv bottleneck, batched over all Bblk*C rows (two MXU matmuls).
    # C is a multiple of the 8-row sublane tile, so this merge is layout-free.
    x2d = xc3.reshape(bblk * c, s)                           # (Bblk*C, S)
    h = jnp.dot(x2d, w1t_ref[...],
                preferred_element_type=jnp.float32) + b1_ref[...]     # (Bblk*C, Sr)
    h = jnp.maximum(h, 0.0)
    feat = jnp.dot(h, w2t_ref[...],
                   preferred_element_type=jnp.float32) + b2_ref[...]  # (Bblk*C, S)
    feat3 = feat.reshape(bblk, c, s)

    # --- neuron-affinity attention (per batch element), softmax over lanes.
    m = jnp.mean(xc3, axis=-1)                               # (Bblk, C)
    diff = m[:, None, :] - m[:, :, None]                     # (Bblk, C, C): m_c - m_d
    score = -(diff * diff)
    # score[b, d, d] == 0 is exactly the row max -> no max-subtraction needed.
    e = jnp.exp(score)
    attn = e / jnp.sum(e, axis=-1, keepdims=True)            # (Bblk, C, C)

    out = jnp.einsum('bdc,bcs->bds', attn, feat3,
                     preferred_element_type=jnp.float32)     # (Bblk, C, S)

    # --- folded BatchNorm1d (eval) + residual + ReLU, all lane-aligned.
    out = gamma_ref[...] * out + beta_ref[...]
    out_ref[...] = jnp.maximum(xc3 + out, 0.0)


def _pick_block_batch(B, C, S):
    """Batch elements per grid step: enough rows (Bblk*C) to fill the MXU's
    M dimension (256 on v6e/v7x; 128 already saturates v5e), capped so the
    double-buffered (Bblk, C, S) input/output blocks stay small in VMEM."""
    row_target = max(1, 256 // max(C, 1))
    vmem_cap = max(1, (4 << 20) // max(1, C * S * 4))        # ~4 MiB f32 per block
    cap = max(1, min(row_target, vmem_cap, B))
    for bblk in range(cap, 0, -1):
        if B % bblk == 0:
            return bblk
    return 1


def cross_neuron_block(x, params):
    """x: (B, C, H, W) float32 NCHW. Returns the same shape."""
    B, C, H, W = x.shape
    S = H * W
    w1, b1, w2, b2, gamma, beta, run_mean, run_var = params
    Sr = w1.shape[0]

    # Free reshape only — the kernel works in the native (B, C, S) layout.
    xc = x.reshape(B, C, S)

    # Transposed weights so the kernel computes h^T / feat^T directly.
    w1t = jnp.transpose(w1)                                  # (S, Sr)
    w2t = jnp.transpose(w2)                                  # (Sr, S)
    b1r = b1.reshape(1, Sr)
    b2r = b2.reshape(1, S)

    # Fold BatchNorm1d eval-mode running stats + affine into a single FMA.
    inv_std = jax.lax.rsqrt(run_var + BN_EPS)                # (S,)
    gamma_eff = (gamma * inv_std).reshape(1, S)
    beta_eff = (beta - run_mean * gamma * inv_std).reshape(1, S)

    bblk = _pick_block_batch(B, C, S)
    grid = (B // bblk,)

    full = lambda shape: pl.BlockSpec(shape, lambda i: (0,) * len(shape))

    # For production ResNet shapes (C~256, S~3136) add a C-tile grid axis and
    # set pltpu.CompilerParams(vmem_limit_bytes=...); unnecessary at demo sizes.
    out_c = pl.pallas_call(
        _cross_neuron_kernel,
        grid=grid,
        in_specs=[
            pl.BlockSpec((bblk, C, S), lambda i: (i, 0, 0)),  # x, Bblk per step
            full((S, Sr)),      # w1^T
            full((1, Sr)),      # b1 (long axis on lanes)
            full((Sr, S)),      # w2^T
            full((1, S)),       # b2
            full((1, S)),       # gamma_eff (BN folded)
            full((1, S)),       # beta_eff  (BN folded)
        ],
        out_specs=pl.BlockSpec((bblk, C, S), lambda i: (i, 0, 0)),
        out_shape=jax.ShapeDtypeStruct((B, C, S), jnp.float32),
        compiler_params=pltpu.CompilerParams(
            dimension_semantics=("parallel",)),
    )(xc, w1t, b1r, w2t, b2r, gamma_eff, beta_eff)

    return out_c.reshape(B, C, H, W)


def init_params(key, S, reduction=8):
    Sr = max(1, S // reduction)
    ks = jax.random.split(key, 8)
    w1 = jax.random.normal(ks[0], (Sr, S), jnp.float32) * 0.05
    b1 = jax.random.normal(ks[1], (Sr,), jnp.float32) * 0.01
    w2 = jax.random.normal(ks[2], (S, Sr), jnp.float32) * 0.05
    b2 = jax.random.normal(ks[3], (S,), jnp.float32) * 0.01
    gamma = 1.0 + 0.1 * jax.random.normal(ks[4], (S,), jnp.float32)
    beta = 0.1 * jax.random.normal(ks[5], (S,), jnp.float32)
    run_mean = 0.1 * jax.random.normal(ks[6], (S,), jnp.float32)
    run_var = 1.0 + 0.1 * jnp.abs(jax.random.normal(ks[7], (S,), jnp.float32))
    return (w1, b1, w2, b2, gamma, beta, run_mean, run_var)


def reference(x, params):
    """Pure-JAX reference of the same math, in the original (S, C) orientation."""
    B, C, H, W = x.shape
    S = H * W
    w1, b1, w2, b2, gamma, beta, run_mean, run_var = params
    hp = jax.lax.Precision.HIGHEST
    xv = jnp.transpose(x.reshape(B, C, S), (0, 2, 1))        # (B, S, C)
    h = jnp.maximum(jnp.einsum('rs,bsc->brc', w1, xv, precision=hp)
                    + b1[None, :, None], 0.0)
    feat = jnp.einsum('sr,brc->bsc', w2, h, precision=hp) + b2[None, :, None]
    m = jnp.mean(xv, axis=1)                                 # (B, C)
    diff = m[:, None, :] - m[:, :, None]                     # (B, C, C): m_j - m_i
    score = -(diff * diff)
    attn = jax.nn.softmax(score, axis=1)                     # torch softmax dim=1
    out = jnp.einsum('bsc,bcd->bsd', feat, attn, precision=hp)
    inv_std = jax.lax.rsqrt(run_var + BN_EPS)
    out = ((out - run_mean[None, :, None]) * inv_std[None, :, None]
           * gamma[None, :, None] + beta[None, :, None])
    y = jnp.maximum(xv + out, 0.0)
    return jnp.transpose(y, (0, 2, 1)).reshape(B, C, H, W)


if __name__ == "__main__":
    key = jax.random.PRNGKey(0)
    kx, kp = jax.random.split(key)

    # Small shapes consistent with an early ResNet stage with the cross-neuron
    # block inserted; S = H*W = 256 keeps the lane axis fully dense.
    B, C, H, W = 2, 16, 16, 16
    x = jax.random.normal(kx, (B, C, H, W), jnp.float32)
    params = init_params(kp, H * W, reduction=8)

    y = cross_neuron_block(x, params)
    y = jax.block_until_ready(y)

    y_ref = reference(x, params)
    assert y.shape == (B, C, H, W)
    assert jnp.allclose(y, y_ref, atol=1e-4, rtol=1e-4), "mismatch vs reference"

    print("KERNEL_OK")
</pallas_src>

<mosaic_0001>
module attributes {stable_mosaic.version = 11 : i64} {
  func.func @_cross_neuron_kernel(%arg0: i32, %arg1: memref<2x16x256xf32, #tpu.memory_space<vmem>>, %arg2: memref<256x32xf32, #tpu.memory_space<vmem>>, %arg3: memref<1x32xf32, #tpu.memory_space<vmem>>, %arg4: memref<32x256xf32, #tpu.memory_space<vmem>>, %arg5: memref<1x256xf32, #tpu.memory_space<vmem>>, %arg6: memref<1x256xf32, #tpu.memory_space<vmem>>, %arg7: memref<1x256xf32, #tpu.memory_space<vmem>>, %arg8: memref<2x16x256xf32, #tpu.memory_space<vmem>>) attributes {dimension_semantics = [#tpu.dimension_semantics<parallel>], iteration_bounds = array<i64: 1>, scalar_prefetch = 0 : i64, scratch_operands = 0 : i64, tpu.core_type = #tpu.core_type<tc>, window_params = [{transform_indices = @transform_0, window_bounds = array<i64: 2, 16, 256>}, {pipeline_mode = #tpu.pipeline_mode<synchronous>, transform_indices = @transform_1, window_bounds = array<i64: 256, 32>}, {pipeline_mode = #tpu.pipeline_mode<synchronous>, transform_indices = @transform_2, window_bounds = array<i64: 1, 32>}, {pipeline_mode = #tpu.pipeline_mode<synchronous>, transform_indices = @transform_3, window_bounds = array<i64: 32, 256>}, {pipeline_mode = #tpu.pipeline_mode<synchronous>, transform_indices = @transform_4, window_bounds = array<i64: 1, 256>}, {pipeline_mode = #tpu.pipeline_mode<synchronous>, transform_indices = @transform_5, window_bounds = array<i64: 1, 256>}, {pipeline_mode = #tpu.pipeline_mode<synchronous>, transform_indices = @transform_6, window_bounds = array<i64: 1, 256>}, {transform_indices = @transform_7, window_bounds = array<i64: 2, 16, 256>}]} {
    %c0 = arith.constant 0 : index
    %c0_0 = arith.constant 0 : index
    %c0_1 = arith.constant 0 : index
    %0 = vector.load %arg1[%c0, %c0_0, %c0_1] : memref<2x16x256xf32, #tpu.memory_space<vmem>>, vector<2x16x256xf32>
    %1 = vector.shape_cast %0 : vector<2x16x256xf32> to vector<32x256xf32>
    %c0_2 = arith.constant 0 : index
    %c0_3 = arith.constant 0 : index
    %2 = vector.load %arg2[%c0_2, %c0_3] : memref<256x32xf32, #tpu.memory_space<vmem>>, vector<256x32xf32>
    %cst = arith.constant dense<0.000000e+00> : vector<32x32xf32>
    %3 = tpu.matmul %1, %2, %cst {dimension_numbers = #tpu.dot_dimension_numbers<[1], [0], [0], [1], [0, 0, 1, 1], [], []>} : vector<32x256xf32>, vector<256x32xf32>, vector<32x32xf32> -> vector<32x32xf32>
    %c0_4 = arith.constant 0 : index
    %c0_5 = arith.constant 0 : index
    %4 = vector.load %arg3[%c0_4, %c0_5] : memref<1x32xf32, #tpu.memory_space<vmem>>, vector<1x32xf32>
    %5 = vector.broadcast %4 : vector<1x32xf32> to vector<32x32xf32>
    %6 = arith.addf %3, %5 : vector<32x32xf32>
    %cst_6 = arith.constant 0.000000e+00 : f32
    %7 = vector.broadcast %cst_6 : f32 to vector<32x32xf32>
    %8 = arith.maximumf %6, %7 : vector<32x32xf32>
    %c0_7 = arith.constant 0 : index
    %c0_8 = arith.constant 0 : index
    %9 = vector.load %arg4[%c0_7, %c0_8] : memref<32x256xf32, #tpu.memory_space<vmem>>, vector<32x256xf32>
    %cst_9 = arith.constant dense<0.000000e+00> : vector<32x256xf32>
    %10 = tpu.matmul %8, %9, %cst_9 {dimension_numbers = #tpu.dot_dimension_numbers<[1], [0], [0], [1], [0, 0, 1, 1], [], []>} : vector<32x32xf32>, vector<32x256xf32>, vector<32x256xf32> -> vector<32x256xf32>
    %c0_10 = arith.constant 0 : index
    %c0_11 = arith.constant 0 : index
    %11 = vector.load %arg5[%c0_10, %c0_11] : memref<1x256xf32, #tpu.memory_space<vmem>>, vector<1x256xf32>
    %12 = vector.broadcast %11 : vector<1x256xf32> to vector<32x256xf32>
    %13 = arith.addf %10, %12 : vector<32x256xf32>
    %14 = vector.shape_cast %13 : vector<32x256xf32> to vector<2x16x256xf32>
    %cst_12 = arith.constant dense<0.000000e+00> : vector<2x16xf32>
    %15 = vector.multi_reduction <add>, %0, %cst_12 [2] : vector<2x16x256xf32> to vector<2x16xf32>
    %cst_13 = arith.constant 2.560000e+02 : f32
    %16 = vector.broadcast %cst_13 : f32 to vector<2x16xf32>
    %17 = arith.divf %15, %16 : vector<2x16xf32>
    %18 = vector.shape_cast %17 : vector<2x16xf32> to vector<2x1x16xf32>
    %19 = vector.shape_cast %17 : vector<2x16xf32> to vector<2x16x1xf32>
    %20 = vector.broadcast %18 : vector<2x1x16xf32> to vector<2x16x16xf32>
    %21 = vector.broadcast %19 : vector<2x16x1xf32> to vector<2x16x16xf32>
    %22 = arith.subf %20, %21 : vector<2x16x16xf32>
    %23 = arith.mulf %22, %22 : vector<2x16x16xf32>
    %cst_14 = arith.constant 0.000000e+00 : f32
    %24 = vector.broadcast %cst_14 : f32 to vector<2x16x16xf32>
    %25 = arith.subf %24, %23 : vector<2x16x16xf32>
    %26 = math.exp %25 : vector<2x16x16xf32>
    %cst_15 = arith.constant dense<0.000000e+00> : vector<2x16xf32>
    %27 = vector.multi_reduction <add>, %26, %cst_15 [2] : vector<2x16x16xf32> to vector<2x16xf32>
    %28 = vector.shape_cast %27 : vector<2x16xf32> to vector<2x16x1xf32>
    %29 = vector.broadcast %28 : vector<2x16x1xf32> to vector<2x16x16xf32>
    %30 = arith.divf %26, %29 : vector<2x16x16xf32>
    "tpu.trace_start"() <{level = 10 : i32, message = "bdc,bcs->bds"}> : () -> ()
    %cst_16 = arith.constant dense<0.000000e+00> : vector<2x16x256xf32>
    %31 = tpu.matmul %30, %14, %cst_16 {dimension_numbers = #tpu.dot_dimension_numbers<[2], [1], [1], [2], [0, 0, 0, 1, 1, 2], [0], [0]>} : vector<2x16x16xf32>, vector<2x16x256xf32>, vector<2x16x256xf32> -> vector<2x16x256xf32>
    "tpu.trace_stop"() : () -> ()
    %c0_17 = arith.constant 0 : index
    %c0_18 = arith.constant 0 : index
    %32 = vector.load %arg6[%c0_17, %c0_18] : memref<1x256xf32, #tpu.memory_space<vmem>>, vector<1x256xf32>
    %33 = vector.shape_cast %32 : vector<1x256xf32> to vector<1x1x256xf32>
    %34 = vector.broadcast %33 : vector<1x1x256xf32> to vector<2x16x256xf32>
    %35 = arith.mulf %34, %31 : vector<2x16x256xf32>
    %c0_19 = arith.constant 0 : index
    %c0_20 = arith.constant 0 : index
    %36 = vector.load %arg7[%c0_19, %c0_20] : memref<1x256xf32, #tpu.memory_space<vmem>>, vector<1x256xf32>
    %37 = vector.shape_cast %36 : vector<1x256xf32> to vector<1x1x256xf32>
    %38 = vector.broadcast %37 : vector<1x1x256xf32> to vector<2x16x256xf32>
    %39 = arith.addf %35, %38 : vector<2x16x256xf32>
    %40 = arith.addf %0, %39 : vector<2x16x256xf32>
    %cst_21 = arith.constant 0.000000e+00 : f32
    %41 = vector.broadcast %cst_21 : f32 to vector<2x16x256xf32>
    %42 = arith.maximumf %40, %41 : vector<2x16x256xf32>
    %c0_22 = arith.constant 0 : index
    %c0_23 = arith.constant 0 : index
    %c0_24 = arith.constant 0 : index
    %43 = vector.load %arg8[%c0_22, %c0_23, %c0_24] : memref<2x16x256xf32, #tpu.memory_space<vmem>>, vector<2x16x256xf32>
    tpu.vector_store %arg8[%c0_22, %c0_23, %c0_24], %42 {strides = array<i32>} : memref<2x16x256xf32, #tpu.memory_space<vmem>>, vector<2x16x256xf32>,
    return
  }
  func.func @transform_0(%arg0: i32) -> (i32, i32, i32) {
    %c0_i32 = arith.constant 0 : i32
    %c0_i32_0 = arith.constant 0 : i32
    %c0_i32_1 = arith.constant 0 : i32
    return %arg0, %c0_i32, %c0_i32_0 : i32, i32, i32
  }
  func.func @transform_1(%arg0: i32) -> (i32, i32) {
    %c0_i32 = arith.constant 0 : i32
    %c0_i32_0 = arith.constant 0 : i32
    %c0_i32_1 = arith.constant 0 : i32
    return %c0_i32, %c0_i32_0 : i32, i32
  }
  func.func @transform_2(%arg0: i32) -> (i32, i32) {
    %c0_i32 = arith.constant 0 : i32
    %c0_i32_0 = arith.constant 0 : i32
    %c0_i32_1 = arith.constant 0 : i32
    return %c0_i32, %c0_i32_0 : i32, i32
  }
  func.func @transform_3(%arg0: i32) -> (i32, i32) {
    %c0_i32 = arith.constant 0 : i32
    %c0_i32_0 = arith.constant 0 : i32
    %c0_i32_1 = arith.constant 0 : i32
    return %c0_i32, %c0_i32_0 : i32, i32
  }
  func.func @transform_4(%arg0: i32) -> (i32, i32) {
    %c0_i32 = arith.constant 0 : i32
    %c0_i32_0 = arith.constant 0 : i32
    %c0_i32_1 = arith.constant 0 : i32
    return %c0_i32, %c0_i32_0 : i32, i32
  }
  func.func @transform_5(%arg0: i32) -> (i32, i32) {
    %c0_i32 = arith.constant 0 : i32
    %c0_i32_0 = arith.constant 0 : i32
    %c0_i32_1 = arith.constant 0 : i32
    return %c0_i32, %c0_i32_0 : i32, i32
  }
  func.func @transform_6(%arg0: i32) -> (i32, i32) {
    %c0_i32 = arith.constant 0 : i32
    %c0_i32_0 = arith.constant 0 : i32
    %c0_i32_1 = arith.constant 0 : i32
    return %c0_i32, %c0_i32_0 : i32, i32
  }
  func.func @transform_7(%arg0: i32) -> (i32, i32, i32) {
    %c0_i32 = arith.constant 0 : i32
    %c0_i32_0 = arith.constant 0 : i32
    %c0_i32_1 = arith.constant 0 : i32
    return %arg0, %c0_i32, %c0_i32_0 : i32, i32, i32
  }
}

</mosaic_0001>

<bundles_post_ra>
// kernel: tpu_custom_call.1
= control target key start
LH: loop header
LB: loop body
LE: loop exit
PB: predicated region body
PF: predicated region fallthrough
CT: control target
= control target key end

     0   :  { %s4211_s0 = inlined_call_operand.vmem [shape: f32[2,16,256], index: 0, kind: input, shape index: {}]   ;;  %s4212_s1 = inlined_call_operand.vmem [shape: f32[256,32], index: 1, kind: input, shape index: {}]   ;;  %s4213_s2 = inlined_call_operand.vmem [shape: f32[1,32], index: 2, kind: input, shape index: {}]   ;;  %s4214_s3 = inlined_call_operand.vmem [shape: f32[32,256], index: 3, kind: input, shape index: {}]   ;;  %s4215_s4 = inlined_call_operand.vmem [shape: f32[1,256], index: 4, kind: input, shape index: {}]   ;;  %s4216_s5 = inlined_call_operand.vmem [shape: f32[1,256], index: 5, kind: input, shape index: {}]   ;;  %s4217_s6 = inlined_call_operand.vmem [shape: f32[1,256], index: 6, kind: input, shape index: {}]   ;;  %s4218_s7 = inlined_call_operand.hbm [shape: f32[2,16,256], index: 7, kind: output, shape index: {}]  }
   0x1   :  { %v27_v0 = vld [vmem:[%s4211_s0] sm:$0xff]  ;;  %v28_v1 = vld [vmem:[%s4211_s0 + $0x8] sm:$0xff] }
   0x2   :  { %v218_v2 = vadd.f32 %v28_v1, %v27_v0  ;;  %v31_v3 = vld [vmem:[%s4211_s0 + $0x20] sm:$0xff]  ;;  %v32_v4 = vld [vmem:[%s4211_s0 + $0x28] sm:$0xff] }
   0x3   :  { %v224_v5 = vadd.f32 %v32_v4, %v31_v3 }
   0x4   :  { %219 = vadd.xlane.f32.xlu0 %v218_v2 }
   0x5   :  { %12 = vsyncpa [#allocation3], 0  ;;  %v29_v6 = vld [vmem:[%s4211_s0 + $0x10] sm:$0xff]  ;;  %v30_v7 = vld [vmem:[%s4211_s0 + $0x18] sm:$0xff]  ;;  %225 = vadd.xlane.f32.xlu1 %v224_v5  ;;  %v2428_v12 = vmov 256.0   ;;  %v2429_v13 = vmov 0  }
   0x6   :  { %v33_v8 = vld [vmem:[%s4211_s0 + $0x30] sm:$0xff]  ;;  %v34_v9 = vld [vmem:[%s4211_s0 + $0x38] sm:$0xff]  ;;  %v221_v10 = vadd.f32 %v30_v7, %v29_v6  ;;  %2192 = vrcp.f32 %v2428_v12  ;;  %2189 = vset.pattern.permute.xlu0 %v2429_v13  ;;  %2188 = vset.pattern.permute.xlu2 %v2429_v13  ;;  %vm890_vm1 = vcmask 130112   ;;  %vm985_vm2 = vcmask 1041409   ;;  %s2430_s11 = smov [#allocation2]   ;;  %s2155_s14 = sshll.u32 %s4218_s7, 4  ;;  %s2156_s14 = int_to_ptr.hbm [resolvable:$true] %s2155_s14 }
   0x7   :  { %v227_v11 = vadd.f32 %v34_v9, %v33_v8  ;;  %2190 = vset.pattern.permute.xlu1 %v2429_v13  ;;  %vm987_vm3 = vcmask 1042434   ;;  %vm989_vm4 = vcmask 1043459   ;;  %vm991_vm5 = vcmask 1044484   ;;  %s2153_s12 = sshll.u32 %s2430_s11, 4  ;;  %s2431_s19 = smov 256   ;;  %s2154_s12 = int_to_ptr.vmem [resolvable:$true] %s2153_s12 }
   0x8   :  { %vm993_vm6 = vcmask 1045509   ;;  %vm995_vm7 = vcmask 1046534   ;;  %vm4266_vm8 = vcmask 1047559   ;;  %vm4265_vm9 = vcmask 130048   ;;  %s2432_s20 = smov 16  }
   0x9   :  { %vm147_vm10 = vcmask 261120  }
   0xc   :  { %222 = vadd.xlane.f32.xlu0 %v221_v10  ;;  %v2193_v14 = vpop.eup %2192 }
   0xd   :  { %228 = vadd.xlane.f32.xlu1 %v227_v11  ;;  %v231_v15 = vmul.f32 256.0, %v2193_v14  ;;  %vm235_vm0 = vweird.f32 %v2193_v14 }
   0xf   :  { %v232_v16 = vsub.f32 1.0, %v231_v15 }
  0x11   :  { %v233_v17 = vmul.f32 %v2193_v14, %v232_v16 }
  0x13   :  { %v234_v18 = vadd.f32 %v2193_v14, %v233_v17 }
  0x15   :  { %v2497_v19 = vsel %vm235_vm0, %v2193_v14, %v234_v18 }
  0x77   :  { %v220_v20 = vpop.xlane.xlu0 %219 }
  0x78   :  { %v2500_v21 = vmul.f32 %v2497_v19, %v220_v20 }
  0x7a   :  { %v246_v22 = vperm.slane %v2500_v21, 1  ;;  %v245_v23 = vperm.slane %v2500_v21, 0  ;;  %v249_v29 = vperm.slane %v2500_v21, 4  ;;  %v252_v33 = vperm.slane %v2500_v21, 7 }
  0x7b   :  { %v250_v34 = vperm.slane %v2500_v21, 5  ;;  %v247_v35 = vperm.slane %v2500_v21, 2  ;;  %v251_v9 = vperm.slane %v2500_v21, 6  ;;  %v248_v10 = vperm.slane %v2500_v21, 3 }
  0x7c   :  { %v311_v24 = vsub.f32 %v2500_v21, %v246_v22  ;;  %v309_v25 = vsub.f32 %v2500_v21, %v245_v23  ;;  %v317_v41 = vsub.f32 %v2500_v21, %v249_v29  ;;  %v323_v44 = vsub.f32 %v2500_v21, %v252_v33 }
  0x7d   :  { %v313_v46 = vsub.f32 %v2500_v21, %v247_v35  ;;  %v319_v60 = vsub.f32 %v2500_v21, %v250_v34  ;;  %v315_v18 = vsub.f32 %v2500_v21, %v248_v10 }
  0x7e   :  { %v375_v26 = vmul.f32 %v311_v24, %v311_v24  ;;  %v373_v27 = vmul.f32 %v309_v25, %v309_v25  ;;  %v381_v50 = vmul.f32 %v317_v41, %v317_v41  ;;  %v387_v52 = vmul.f32 %v323_v44, %v323_v44 }
  0x7f   :  { %v223_v28 = vpop.xlane.xlu0 %222  ;;  %v377_v56 = vmul.f32 %v313_v46, %v313_v46  ;;  %v383_v2 = vmul.f32 %v319_v60, %v319_v60 }
  0x80   :  { %v2508_v30 = vmul.f32 %v2497_v19, %v223_v28  ;;  %v439_v31 = vsub.f32 0.0, %v375_v26  ;;  %v437_v32 = vsub.f32 0.0, %v373_v27  ;;  %v445_v59 = vsub.f32 0.0, %v381_v50 }
  0x81   :  { %v451_v61 = vsub.f32 0.0, %v387_v52  ;;  %v441_v63 = vsub.f32 0.0, %v377_v56  ;;  %v447_v13 = vsub.f32 0.0, %v383_v2  ;;  %v379_v28 = vmul.f32 %v315_v18, %v315_v18 }
  0x82   :  { %v505_v36 = vmul.f32 1.442695, %v439_v31  ;;  %v501_v37 = vmul.f32 1.442695, %v437_v32  ;;  %v310_v38 = vsub.f32 %v2508_v30, %v245_v23  ;;  %v312_v39 = vsub.f32 %v2508_v30, %v246_v22 }
  0x83   :  { %v320_v40 = vsub.f32 %v2508_v30, %v250_v34  ;;  %v253_v53 = vperm.slane %v2508_v30, 0  ;;  %v314_v0 = vsub.f32 %v2508_v30, %v247_v35  ;;  %v517_v1 = vmul.f32 1.442695, %v445_v59 }
  0x84   :  { %2194 = vpow2.f32 %v505_v36  ;;  %v374_v42 = vmul.f32 %v310_v38, %v310_v38  ;;  %v376_v43 = vmul.f32 %v312_v39, %v312_v39  ;;  %v529_v3 = vmul.f32 1.442695, %v451_v61 }
  0x85   :  { %2196 = vpow2.f32 %v501_v37  ;;  %v384_v45 = vmul.f32 %v320_v40, %v320_v40  ;;  %v326_v62 = vsub.f32 %v2508_v30, %v253_v53  ;;  %v255_v5 = vperm.slane %v2508_v30, 2 }
  0x86   :  { %v438_v47 = vsub.f32 0.0, %v374_v42  ;;  %v440_v48 = vsub.f32 0.0, %v376_v43  ;;  %v509_v7 = vmul.f32 1.442695, %v441_v63  ;;  %v378_v8 = vmul.f32 %v314_v0, %v314_v0 }
  0x87   :  { %v448_v49 = vsub.f32 0.0, %v384_v45  ;;  %v390_v4 = vmul.f32 %v326_v62, %v326_v62  ;;  %v322_v14 = vsub.f32 %v2508_v30, %v251_v9  ;;  %v329_v16 = vsub.f32 %v2500_v21, %v255_v5  ;;  %v226_v62 = vpop.xlane.xlu1 %225 }
  0x88   :  { %v507_v51 = vmul.f32 1.442695, %v440_v48  ;;  %v503_v54 = vmul.f32 1.442695, %v438_v47  ;;  %v442_v17 = vsub.f32 0.0, %v378_v8  ;;  %v256_v25 = vperm.slane %v2508_v30, 3 }
  0x89   :  { %v523_v55 = vmul.f32 1.442695, %v448_v49  ;;  %v454_v15 = vsub.f32 0.0, %v390_v4  ;;  %v521_v20 = vmul.f32 1.442695, %v447_v13  ;;  %v386_v22 = vmul.f32 %v322_v14, %v322_v14 }
  0x8a   :  { %v2524_v57 = vpop.eup %2194  ;;  %2198 = vpow2.f32 %v507_v51  ;;  %v393_v24 = vmul.f32 %v329_v16, %v329_v16  ;;  %v511_v27 = vmul.f32 1.442695, %v442_v17  ;;  %v325_v35 = vsub.f32 %v2500_v21, %v253_v53 }
  0x8b   :  { %v2526_v58 = vpop.eup %2196  ;;  %700 = vperm.xlu0 %2189, %v2524_v57   ;;  %2200 = vpow2.f32 %v523_v55  ;;  %v535_v23 = vmul.f32 1.442695, %v454_v15  ;;  %v450_v34 = vsub.f32 0.0, %v386_v22  ;;  %v332_v37 = vsub.f32 %v2508_v30, %v256_v25 }
  0x8c   :  { %694 = vperm.xlu2 %2188, %v2526_v58   ;;  %2202 = vpow2.f32 %v503_v54  ;;  %v457_v36 = vsub.f32 0.0, %v393_v24  ;;  %v443_v38 = vsub.f32 0.0, %v379_v28  ;;  %v316_v39 = vsub.f32 %v2508_v30, %v248_v10 }
  0x8d   :  { %2204 = vpow2.f32 %v517_v1  ;;  %v260_v40 = vperm.slane %v2508_v30, 7  ;;  %v527_v41 = vmul.f32 1.442695, %v450_v34  ;;  %v389_v42 = vmul.f32 %v325_v35, %v325_v35 }
  0x8e   :  { %2206 = vpow2.f32 %v529_v3  ;;  %v254_v43 = vperm.slane %v2508_v30, 1  ;;  %v541_v44 = vmul.f32 1.442695, %v457_v36  ;;  %v396_v45 = vmul.f32 %v332_v37, %v332_v37 }
  0x8f   :  { %2208 = vpow2.f32 %v509_v7  ;;  %v258_v46 = vperm.slane %v2508_v30, 5  ;;  %v513_v48 = vmul.f32 1.442695, %v443_v38  ;;  %v380_v49 = vmul.f32 %v316_v39, %v316_v39  ;;  %v229_v38 = vpop.xlane.xlu1 %228 }
  0x90   :  { %v2534_v6 = vpop.eup %2198  ;;  %2210 = vpow2.f32 %v521_v20  ;;  %v2573_v50 = vsub.f32 %v2500_v21, %v260_v40  ;;  %v453_v53 = vsub.f32 0.0, %v389_v42  ;;  %v328_v54 = vsub.f32 %v2508_v30, %v254_v43 }
  0x91   :  { %v2538_v11 = vpop.eup %2200  ;;  %703 = vperm.xlu1 %2190, %v2534_v6   ;;  %2212 = vpow2.f32 %v535_v23  ;;  %v460_v55 = vsub.f32 0.0, %v396_v45  ;;  %v335_v56 = vsub.f32 %v2500_v21, %v258_v46  ;;  %v444_v59 = vsub.f32 0.0, %v380_v49 }
  0x92   :  { %v2541_v12 = vpop.eup %2202  ;;  %2214 = vpow2.f32 %v511_v27  ;;  %v318_v60 = vsub.f32 %v2508_v30, %v249_v29  ;;  %v533_v61 = vmul.f32 1.442695, %v453_v53  ;;  %v392_v63 = vmul.f32 %v328_v54, %v328_v54 }
  0x93   :  { %727 = vperm.xlu0 %2189, %v2538_v11   ;;  %v2553_v26 = vpop.eup %2204  ;;  %2216 = vpow2.f32 %v527_v41  ;;  %v547_v0 = vmul.f32 1.442695, %v460_v55  ;;  %v399_v1 = vmul.f32 %v335_v56, %v335_v56  ;;  %v259_v2 = vperm.slane %v2508_v30, 6 }
  0x94   :  { %697 = vperm.xlu2 %2188, %v2541_v12   ;;  %v2555_v31 = vpop.eup %2206  ;;  %2218 = vpow2.f32 %v541_v44  ;;  %v515_v4 = vmul.f32 1.442695, %v444_v59  ;;  %v382_v7 = vmul.f32 %v318_v60, %v318_v60  ;;  %v2598_v10 = vmul.f32 %v2497_v19, %v226_v62 }
  0x95   :  { %v2558_v32 = vpop.eup %2208  ;;  %2220 = vpow2.f32 %v513_v48  ;;  %v456_v29 = vsub.f32 0.0, %v392_v63  ;;  %v331_v14 = vsub.f32 %v2500_v21, %v256_v25  ;;  %v463_v15 = vsub.f32 0.0, %v399_v1 }
  0x96   :  { %v2568_v47 = vpop.eup %2210  ;;  %2222 = vpow2.f32 %v533_v61  ;;  %v338_v16 = vsub.f32 %v2508_v30, %v259_v2  ;;  %v446_v17 = vsub.f32 0.0, %v382_v7  ;;  %v321_v18 = vsub.f32 %v2500_v21, %v251_v9 }
  0x97   :  { %v2575_v51 = vpop.eup %2212  ;;  %2224 = vpow2.f32 %v547_v0  ;;  %v261_v20 = vperm.slane %v2598_v10, 0  ;;  %v539_v22 = vmul.f32 1.442695, %v456_v29  ;;  %v395_v23 = vmul.f32 %v331_v14, %v331_v14 }
  0x98   :  { %v2578_v52 = vpop.eup %2214  ;;  %2226 = vpow2.f32 %v515_v4  ;;  %v257_v24 = vperm.slane %v2508_v30, 4  ;;  %v553_v27 = vmul.f32 1.442695, %v463_v15  ;;  %v402_v25 = vmul.f32 %v338_v16, %v338_v16 }
  0x99   :  { %718 = vperm.xlu1 %2190, %v2553_v26   ;;  %v2592_v3 = vpop.eup %2216  ;;  %v519_v34 = vmul.f32 1.442695, %v446_v17  ;;  %v385_v35 = vmul.f32 %v321_v18, %v321_v18  ;;  %v341_v9 = vsub.f32 %v2598_v10, %v261_v20  ;;  %2228 = vpow2.f32 %v539_v22 }
  0x9a   :  { %v2594_v8 = vpop.eup %2218  ;;  %v459_v39 = vsub.f32 0.0, %v395_v23  ;;  %v334_v41 = vsub.f32 %v2508_v30, %v257_v24  ;;  %2230 = vpow2.f32 %v553_v27  ;;  %v466_v42 = vsub.f32 0.0, %v402_v25 }
  0x9b   :  { %736 = vperm.xlu0 %2189, %v2555_v31   ;;  %v2600_v13 = vpop.eup %2220  ;;  %2232 = vpow2.f32 %v519_v34  ;;  %v449_v44 = vsub.f32 0.0, %v385_v35  ;;  %v324_v45 = vsub.f32 %v2508_v30, %v252_v33  ;;  %v2630_v48 = vmul.f32 %v2497_v19, %v229_v38 }
  0x9c   :  { %706 = vperm.xlu2 %2188, %v2558_v32   ;;  %v2611_v28 = vpop.eup %2222  ;;  %v405_v49 = vmul.f32 %v341_v9, %v341_v9  ;;  %v262_v53 = vperm.slane %v2598_v10, 1  ;;  %v545_v54 = vmul.f32 1.442695, %v459_v39  ;;  %v398_v55 = vmul.f32 %v334_v41, %v334_v41 }
  0x9d   :  { %v2613_v36 = vpop.eup %2224  ;;  %v559_v56 = vmul.f32 1.442695, %v466_v42  ;;  %v525_v60 = vmul.f32 1.442695, %v449_v44  ;;  %v388_v61 = vmul.f32 %v324_v45, %v324_v45  ;;  %v337_v1 = vsub.f32 %v2500_v21, %v259_v2 }
  0x9e   :  { %v2619_v37 = vpop.eup %2226  ;;  %v469_v63 = vsub.f32 0.0, %v405_v49  ;;  %v344_v33 = vsub.f32 %v2630_v48, %v262_v53  ;;  %2234 = vpow2.f32 %v545_v54  ;;  %v462_v19 = vsub.f32 0.0, %v398_v55 }
  0x9f   :  { %v2633_v59 = vpop.eup %2228  ;;  %2236 = vpow2.f32 %v559_v56  ;;  %v452_v4 = vsub.f32 0.0, %v388_v61  ;;  %v327_v7 = vsub.f32 %v2500_v21, %v254_v43  ;;  %v4219_v15 = vperm.slane %v2598_v10, 3 }
  0xa0   :  { %v2635_v62 = vpop.eup %2230  ;;  %2238 = vpow2.f32 %v525_v60  ;;  %v565_v29 = vmul.f32 1.442695, %v469_v63  ;;  %v408_v14 = vmul.f32 %v344_v33, %v344_v33  ;;  %v551_v16 = vmul.f32 1.442695, %v462_v19 }
  0xa1   :  { %724 = vperm.xlu1 %2190, %v2568_v47   ;;  %4267 = vst [vmem:[#allocation5_spill] sm:$0xff] %v2635_v62  ;;  %v2639_v0 = vpop.eup %2232  ;;  %v401_v17 = vmul.f32 %v337_v1, %v337_v1  ;;  %v531_v22 = vmul.f32 1.442695, %v452_v4  ;;  %v391_v23 = vmul.f32 %v327_v7, %v327_v7  ;;  %v347_v43 = vsub.f32 %v2598_v10, %v4219_v15 }
  0xa2   :  { %2240 = vpow2.f32 %v565_v29  ;;  %v472_v27 = vsub.f32 0.0, %v408_v14  ;;  %v340_v35 = vsub.f32 %v2508_v30, %v260_v40  ;;  %v330_v38 = vsub.f32 %v2508_v30, %v255_v5 }
  0xa3   :  { %745 = vperm.xlu0 %2189, %v2575_v51   ;;  %2242 = vpow2.f32 %v551_v16  ;;  %v465_v34 = vsub.f32 0.0, %v401_v17  ;;  %v455_v9 = vsub.f32 0.0, %v391_v23  ;;  %v411_v41 = vmul.f32 %v347_v43, %v347_v43 }
  0xa4   :  { %709 = vperm.xlu2 %2188, %v2578_v52   ;;  %v2648_v18 = vpop.eup %2234  ;;  %2244 = vpow2.f32 %v531_v22  ;;  %v571_v39 = vmul.f32 1.442695, %v472_v27  ;;  %v404_v44 = vmul.f32 %v340_v35, %v340_v35  ;;  %v394_v55 = vmul.f32 %v330_v38, %v330_v38 }
  0xa5   :  { %v2650_v2 = vpop.eup %2236  ;;  %v557_v42 = vmul.f32 1.442695, %v465_v34  ;;  %v537_v54 = vmul.f32 1.442695, %v455_v9  ;;  %v475_v40 = vsub.f32 0.0, %v411_v41  ;;  %v265_v56 = vperm.slane %v2598_v10, 4 }
  0xa6   :  { %4268 = vst [vmem:[#allocation6_spill] sm:$0xff] %v2650_v2  ;;  %v2656_v25 = vpop.eup %2238  ;;  %2246 = vpow2.f32 %v571_v39  ;;  %v468_v5 = vsub.f32 0.0, %v404_v44  ;;  %v343_v61 = vsub.f32 %v2598_v10, %v262_v53  ;;  %v458_v33 = vsub.f32 0.0, %v394_v55 }
  0xa7   :  { %2248 = vpow2.f32 %v557_v42  ;;  %v350_v63 = vsub.f32 %v2630_v48, %v265_v56  ;;  %v333_v19 = vsub.f32 %v2500_v21, %v257_v24  ;;  %v577_v1 = vmul.f32 1.442695, %v475_v40 }
  0xa8   :  { %v2666_v45 = vpop.eup %2240  ;;  %2250 = vpow2.f32 %v537_v54  ;;  %v563_v4 = vmul.f32 1.442695, %v468_v5  ;;  %v407_v7 = vmul.f32 %v343_v61, %v343_v61  ;;  %v267_v16 = vperm.slane %v2598_v10, 6 }
  0xa9   :  { %733 = vperm.xlu1 %2190, %v2592_v3   ;;  %4269 = vst [vmem:[#allocation7_spill] sm:$0xff] %v2666_v45  ;;  %v2668_v49 = vpop.eup %2242  ;;  %v414_v14 = vmul.f32 %v350_v63, %v350_v63  ;;  %v543_v53 = vmul.f32 1.442695, %v458_v33  ;;  %v397_v22 = vmul.f32 %v333_v19, %v333_v19  ;;  %v4220_v23 = vperm.slane %v2598_v10, 2 }
  0xaa   :  { %v2672_v60 = vpop.eup %2244  ;;  %2252 = vpow2.f32 %v577_v1  ;;  %v471_v21 = vsub.f32 0.0, %v407_v7  ;;  %v336_v34 = vsub.f32 %v2508_v30, %v258_v46  ;;  %v353_v35 = vsub.f32 %v2598_v10, %v267_v16 }
  0xab   :  { %754 = vperm.xlu0 %2189, %v2594_v8   ;;  %2254 = vpow2.f32 %v563_v4  ;;  %v346_v24 = vsub.f32 %v2630_v48, %v4220_v23  ;;  %v478_v43 = vsub.f32 0.0, %v414_v14  ;;  %v461_v9 = vsub.f32 0.0, %v397_v22 }
  0xac   :  { %712 = vperm.xlu2 %2188, %v2600_v13   ;;  %v2681_v29 = vpop.eup %2246  ;;  %2256 = vpow2.f32 %v543_v53  ;;  %v266_v38 = vperm.slane %v2598_v10, 5  ;;  %v4222_v39 = vperm.slane %v2630_v48, 2  ;;  %v569_v41 = vmul.f32 1.442695, %v471_v21 }
  0xad   :  { %4270 = vst [vmem:[#allocation8_spill] sm:$0xff] %v2681_v29  ;;  %v2684_v17 = vpop.eup %2248  ;;  %v410_v42 = vmul.f32 %v346_v24, %v346_v24  ;;  %v583_v54 = vmul.f32 1.442695, %v478_v43  ;;  %v417_v55 = vmul.f32 %v353_v35, %v353_v35  ;;  %v4224_v40 = vperm.slane %v2630_v48, 4 }
  0xae   :  { %4271 = vst [vmem:[#allocation9_spill] sm:$0xff] %v2684_v17  ;;  %v2688_v27 = vpop.eup %2250  ;;  %v549_v61 = vmul.f32 1.442695, %v461_v9  ;;  %v400_v30 = vmul.f32 %v336_v34, %v336_v34  ;;  %v2709_v46 = vsub.f32 %v2598_v10, %v4222_v39  ;;  %v2712_v63 = vsub.f32 %v2598_v10, %v266_v38 }
  0xaf   :  { %v4223_v33 = vperm.slane %v2598_v10, 7  ;;  %v2719_v19 = vsub.f32 %v2598_v10, %v4224_v40  ;;  %2258 = vpow2.f32 %v569_v41  ;;  %v474_v4 = vsub.f32 0.0, %v410_v42 }
  0xb0   :  { %v2701_v44 = vpop.eup %2252  ;;  %v349_v7 = vsub.f32 %v2598_v10, %v265_v56  ;;  %2260 = vpow2.f32 %v583_v54  ;;  %v481_v14 = vsub.f32 0.0, %v417_v55  ;;  %v464_v22 = vsub.f32 0.0, %v400_v30 }
  0xb1   :  { %742 = vperm.xlu1 %2190, %v2611_v28   ;;  %4272 = vst [vmem:[#allocation10_spill] sm:$0xff] %v2701_v44  ;;  %v2704_v5 = vpop.eup %2254  ;;  %v356_v53 = vsub.f32 %v2630_v48, %v4223_v33  ;;  %2262 = vpow2.f32 %v549_v61  ;;  %v274_v21 = vperm.slane %v2630_v48, 5  ;;  %v575_v24 = vmul.f32 1.442695, %v474_v4 }
  0xb2   :  { %4273 = vst [vmem:[#allocation11_spill] sm:$0xff] %v2704_v5  ;;  %v2721_v1 = vpop.eup %2256  ;;  %v413_v43 = vmul.f32 %v349_v7, %v349_v7  ;;  %v270_v34 = vperm.slane %v2630_v48, 1  ;;  %v589_v56 = vmul.f32 1.442695, %v481_v14  ;;  %v4225_v41 = vperm.slane %v2630_v48, 0 }
  0xb3   :  { %763 = vperm.xlu0 %2189, %v2613_v36   ;;  %v2732_v35 = vsub.f32 %v2630_v48, %v274_v21  ;;  %v420_v9 = vmul.f32 %v356_v53, %v356_v53  ;;  %v2736_v42 = vsub.f32 %v2630_v48, %v267_v16  ;;  %v555_v55 = vmul.f32 1.442695, %v464_v22 }
  0xb4   :  { %715 = vperm.xlu2 %2188, %v2619_v37   ;;  %v403_v61 = vmul.f32 %v2573_v50, %v2573_v50  ;;  %v4221_v30 = vperm.slane %v2630_v48, 7  ;;  %v2744_v4 = vsub.f32 %v2598_v10, %v274_v21  ;;  %v885_v14 = vlaneseq }
  0xb5   :  { %v2738_v54 = vpop.eup %2258  ;;  %2264 = vpow2.f32 %v575_v24  ;;  %v477_v16 = vsub.f32 0.0, %v413_v43  ;;  %v352_v22 = vsub.f32 %v2630_v48, %v266_v38  ;;  %v484_v21 = vsub.f32 0.0, %v420_v9 }
  0xb6   :  { %4274 = vst [vmem:[#allocation12_spill] sm:$0xff] %v2738_v54  ;;  %v2746_v7 = vpop.eup %2260  ;;  %v2756_v50 = vsub.f32 %v2598_v10, %v4221_v30  ;;  %2266 = vpow2.f32 %v589_v56  ;;  %v359_v15 = vsub.f32 %v2598_v10, %v270_v34  ;;  %v2763_v23 = vsub.f32 %v2598_v10, %v4225_v41 }
  0xb7   :  { %4275 = vst [vmem:[#allocation13_spill] sm:$0xff] %v2746_v7  ;;  %v2749_v53 = vpop.eup %2262  ;;  %2268 = vpow2.f32 %v555_v55  ;;  %v467_v24 = vsub.f32 0.0, %v403_v61  ;;  %v342_v38 = vsub.f32 %v2630_v48, %v261_v20  ;;  %v4228_v43 = vperm.slane %v2630_v48, 3 }
  0xb8   :  { %v2770_v39 = vsub.f32 %v2630_v48, %v270_v34  ;;  %v581_v56 = vmul.f32 1.442695, %v477_v16  ;;  %v416_v9 = vmul.f32 %v352_v22, %v352_v22  ;;  %v4233_v33 = vperm.slane %v2630_v48, 6 }
  0xb9   :  { %751 = vperm.xlu1 %2190, %v2633_v59   ;;  %v2773_v40 = vand.u32 127, %v885_v14  ;;  %v595_v41 = vmul.f32 1.442695, %v484_v21  ;;  %v561_v61 = vmul.f32 1.442695, %v467_v24  ;;  %v2780_v20 = vsub.f32 %v2598_v10, %v4228_v43 }
  0xba   :  { %v4277_v34 = vperm.slane %v2630_v48, 4  ;;  %2270 = vpow2.f32 %v581_v56  ;;  %v480_v21 = vsub.f32 0.0, %v416_v9  ;;  %v4280_v24 = vperm.slane %v2598_v10, 7 }
  0xbb   :  { %772 = vperm.xlu0 %2189, %v2635_v62   ;;  %v2775_v55 = vpop.eup %2264  ;;  %2272 = vpow2.f32 %v595_v41  ;;  %v4282_v9 = vperm.slane %v2598_v10, 2 }
  0xbc   :  { %721 = vperm.xlu2 %2188, %v2639_v0   ;;  %4276 = vst [vmem:[#allocation14_spill] sm:$0xff] %v2775_v55  ;;  %v2785_v16 = vsub.f32 %v2630_v48, %v4277_v34  ;;  %v2787_v22 = vpop.eup %2266  ;;  %v2802_v34 = vsub.f32 %v2598_v10, %v4233_v33  ;;  %2274 = vpow2.f32 %v561_v61 }
  0xbd   :  { %4278 = vst [vmem:[#allocation15_spill] sm:$0xff] %v2787_v22  ;;  %v2793_v14 = vpop.eup %2268 }
  0xbe   :  { %4279 = vst [vmem:[#allocation16_spill] sm:$0xff] %v2793_v14 }
  0xc1   :  { %760 = vperm.xlu1 %2190, %v2648_v18  }
  0xc3   :  { %781 = vperm.xlu0 %2189, %v2650_v2   ;;  %v2813_v2 = vpop.eup %2270 }
  0xc4   :  { %730 = vperm.xlu2 %2188, %v2656_v25   ;;  %4283 = vst [vmem:[#allocation17_spill] sm:$0xff] %v2813_v2 }
  0xc9   :  { %769 = vperm.xlu1 %2190, %v2668_v49  }
  0xcb   :  { %790 = vperm.xlu0 %2189, %v2666_v45   ;;  %v587_v45 = vmul.f32 1.442695, %v480_v21 }
  0xcc   :  { %739 = vperm.xlu2 %2188, %v2672_v60  }
  0xcd   :  { %2276 = vpow2.f32 %v587_v45  ;;  %v429_v45 = vmul.f32 %v2719_v19, %v2719_v19 }
  0xd1   :  { %778 = vperm.xlu1 %2190, %v2684_v17   ;;  %v2818_v17 = vpop.eup %2272 }
  0xd2   :  { %4284 = vst [vmem:[#allocation18_spill] sm:$0xff] %v2818_v17 }
  0xd3   :  { %799 = vperm.xlu0 %2189, %v2681_v29  }
  0xd4   :  { %748 = vperm.xlu2 %2188, %v2688_v27  }
  0xd9   :  { %787 = vperm.xlu1 %2190, %v2704_v5  }
  0xdb   :  { %808 = vperm.xlu0 %2189, %v2701_v44   ;;  %v406_v44 = vmul.f32 %v342_v38, %v342_v38  ;;  %v355_v38 = vsub.f32 %v2598_v10, %v4280_v24 }
  0xdc   :  { %757 = vperm.xlu2 %2188, %v2721_v1  }
  0xdd   :  { %v470_v56 = vsub.f32 0.0, %v406_v44  ;;  %v419_v5 = vmul.f32 %v355_v38, %v355_v38 }
  0xdf   :  { %v567_v44 = vmul.f32 1.442695, %v470_v56 }
  0xe1   :  { %796 = vperm.xlu1 %2190, %v2738_v54  }
  0xe3   :  { %817 = vperm.xlu0 %2189, %v2746_v7   ;;  %v423_v7 = vmul.f32 %v359_v15, %v359_v15  ;;  %v2791_v15 = vadd.s32 4294967288, %v2773_v40 }
  0xe4   :  { %766 = vperm.xlu2 %2188, %v2749_v53  }
  0xe5   :  { %v487_v43 = vsub.f32 0.0, %v423_v7 }
  0xe6   :  { %v695_v30 = vpop.permute.xlu2 %694 }
  0xe7   :  { %v887_v54 = vperm.slane %v695_v30, %v2773_v40  ;;  %v601_v41 = vmul.f32 1.442695, %v487_v43  ;;  %v483_v30 = vsub.f32 0.0, %v419_v5  ;;  %v4286_v43 = vperm.slane %v2630_v48, 0 }
  0xe9   :  { %805 = vperm.xlu1 %2190, %v2775_v55   ;;  %v4281_v55 = vperm.slane %v2630_v48, 2  ;;  %2278 = vpow2.f32 %v601_v41  ;;  %v593_v56 = vmul.f32 1.442695, %v483_v30 }
  0xea   :  { %2280 = vpow2.f32 %v567_v44 }
  0xeb   :  { %826 = vperm.xlu0 %2189, %v2787_v22   ;;  %v362_v29 = vsub.f32 %v2630_v48, %v4281_v55  ;;  %v345_v22 = vsub.f32 %v2598_v10, %v4282_v9  ;;  %v2821_v9 = vpop.eup %2274  ;;  %2282 = vpow2.f32 %v593_v56 }
  0xec   :  { %775 = vperm.xlu2 %2188, %v2793_v14   ;;  %4285 = vst [vmem:[#allocation19_spill] sm:$0xff] %v2821_v9  ;;  %v2833_v5 = vpop.eup %2276 }
  0xed   :  { %v426_v7 = vmul.f32 %v362_v29, %v362_v29  ;;  %v409_v61 = vmul.f32 %v345_v22, %v345_v22  ;;  %v358_v29 = vsub.f32 %v2630_v48, %v4286_v43  ;;  %v4287_v22 = vperm.slane %v2598_v10, 3  ;;  %4288 = vst [vmem:[#allocation20_spill] sm:$0xff] %v2833_v5 }
  0xee   :  { %v698_v24 = vpop.permute.xlu2 %697 }
  0xef   :  { %v889_v33 = vperm.slane %v698_v24, %v2791_v15  ;;  %v348_v21 = vsub.f32 %v2630_v48, %v4287_v22  ;;  %v422_v24 = vmul.f32 %v358_v29, %v358_v29 }
  0xf1   :  { %v2816_v55 = vsel %vm890_vm1, %v889_v33, %v887_v54  ;;  %814 = vperm.xlu1 %2190, %v2813_v2   ;;  %v490_v33 = vsub.f32 0.0, %v426_v7  ;;  %v473_v54 = vsub.f32 0.0, %v409_v61  ;;  %v412_v2 = vmul.f32 %v348_v21, %v348_v21 }
  0xf2   :  { %v486_v10 = vsub.f32 0.0, %v422_v24  ;;  %v493_v7 = vsub.f32 0.0, %v429_v45  ;;  %v415_v21 = vmul.f32 %v2712_v63, %v2712_v63  ;;  %v4294_v63 = vperm.slane %v2630_v48, 3 }
  0xf3   :  { %835 = vperm.xlu0 %2189, %v2818_v17   ;;  %v607_v17 = vmul.f32 1.442695, %v490_v33  ;;  %v573_v43 = vmul.f32 1.442695, %v473_v54  ;;  %v476_v19 = vsub.f32 0.0, %v412_v2  ;;  %v425_v54 = vmul.f32 %v2709_v46, %v2709_v46 }
  0xf4   :  { %784 = vperm.xlu2 %2188, %v2821_v9   ;;  %v2835_v9 = vpop.eup %2278  ;;  %v599_v33 = vmul.f32 1.442695, %v486_v10  ;;  %v613_v22 = vmul.f32 1.442695, %v493_v7  ;;  %v479_v10 = vsub.f32 0.0, %v415_v21  ;;  %v435_v21 = vmul.f32 %v2756_v50, %v2756_v50 }
  0xf5   :  { %4289 = vst [vmem:[#allocation21_spill] sm:$0xff] %v2835_v9  ;;  %v2838_v41 = vpop.eup %2280  ;;  %2284 = vpow2.f32 %v607_v17  ;;  %v432_v17 = vmul.f32 %v2732_v35, %v2732_v35  ;;  %v579_v24 = vmul.f32 1.442695, %v476_v19  ;;  %v489_v46 = vsub.f32 0.0, %v425_v54 }
  0xf6   :  { %v707_v38 = vpop.permute.xlu2 %706  ;;  %4290 = vst [vmem:[#allocation22_spill] sm:$0xff] %v2838_v41  ;;  %2286 = vpow2.f32 %v573_v43  ;;  %v2850_v56 = vpop.eup %2282  ;;  %v364_v43 = vsub.f32 %v2630_v48, %v4294_v63  ;;  %v499_v50 = vsub.f32 0.0, %v435_v21  ;;  %v421_v21 = vmul.f32 %v2763_v23, %v2763_v23 }
  0xf7   :  { %v895_v30 = vperm.slane %v707_v38, %v2773_v40  ;;  %4291 = vst [vmem:[#allocation23_spill] sm:$0xff] %v2850_v56  ;;  %2288 = vpow2.f32 %v599_v33  ;;  %v496_v7 = vsub.f32 0.0, %v432_v17  ;;  %v605_v54 = vmul.f32 1.442695, %v489_v46 }
  0xf8   :  { %2290 = vpow2.f32 %v613_v22  ;;  %v428_v63 = vmul.f32 %v364_v43, %v364_v43 }
  0xf9   :  { %823 = vperm.xlu1 %2190, %v2833_v5   ;;  %2292 = vpow2.f32 %v579_v24  ;;  %v619_v22 = vmul.f32 1.442695, %v496_v7  ;;  %v418_v24 = vmul.f32 %v2736_v42, %v2736_v42 }
  0xfa   :  { %2294 = vpow2.f32 %v605_v54 }
  0xfb   :  { %844 = vperm.xlu0 %2189, %v2835_v9   ;;  %v2853_v45 = vpop.eup %2284  ;;  %2296 = vpow2.f32 %v619_v22  ;;  %v482_v42 = vsub.f32 0.0, %v418_v24 }
  0xfc   :  { %793 = vperm.xlu2 %2188, %v2838_v41   ;;  %4292 = vst [vmem:[#allocation24_spill] sm:$0xff] %v2853_v45  ;;  %v2856_v38 = vpop.eup %2286 }
  0xfd   :  { %v701_v44 = vpop.permute.xlu0 %700  ;;  %4293 = vst [vmem:[#allocation25_spill] sm:$0xff] %v2856_v38  ;;  %v591_v22 = vmul.f32 1.442695, %v482_v42 }
  0xfe   :  { %v710_v61 = vpop.permute.xlu2 %709  ;;  %v892_v19 = vperm.slane %v701_v44, %v2773_v40  ;;  %v2872_v44 = vpop.eup %2288 }
  0xff   :  { %v896_v29 = vperm.slane %v710_v61, %v2791_v15  ;;  %4295 = vst [vmem:[#allocation26_spill] sm:$0xff] %v2872_v44  ;;  %v2877_v9 = vpop.eup %2290 }
 0x100   :  { %4296 = vst [vmem:[#allocation27_spill] sm:$0xff] %v2877_v9  ;;  %v2880_v46 = vpop.eup %2292 }
 0x101   :  { %v897_v2 = vsel %vm890_vm1, %v896_v29, %v895_v30  ;;  %832 = vperm.xlu1 %2190, %v2850_v56   ;;  %4297 = vst [vmem:[#allocation28_spill] sm:$0xff] %v2880_v46  ;;  %v2892_v54 = vpop.eup %2294 }
 0x102   :  { %4298 = vst [vmem:[#allocation29_spill] sm:$0xff] %v2892_v54 }
 0x103   :  { %853 = vperm.xlu0 %2189, %v2853_v45   ;;  %v704_v35 = vpop.permute.xlu1 %703 }
 0x104   :  { %802 = vperm.xlu2 %2188, %v2856_v38   ;;  %v893_v61 = vperm.slane %v704_v35, %v2791_v15  ;;  %v585_v35 = vmul.f32 1.442695, %v479_v10  ;;  %v431_v10 = vmul.f32 %v2744_v4, %v2744_v4 }
 0x105   :  { %v2865_v30 = vpop.permute.xlu0 %727 }
 0x106   :  { %v713_v29 = vpop.permute.xlu2 %712  ;;  %v894_v33 = vsel %vm890_vm1, %v893_v61, %v892_v19  ;;  %2298 = vpow2.f32 %v585_v35  ;;  %v2897_v35 = vpop.eup %2296 }
 0x107   :  { %v986_v45 = vsel %vm985_vm2, %v894_v33, %v2816_v55  ;;  %v492_v55 = vsub.f32 0.0, %v428_v63  ;;  %v898_v7 = vperm.slane %v713_v29, %v2773_v40  ;;  %v625_v33 = vmul.f32 1.442695, %v499_v50  ;;  %4299 = vst [vmem:[#allocation30_spill] sm:$0xff] %v2897_v35 }
 0x108   :  { %v988_v17 = vsel %vm987_vm3, %v897_v2, %v986_v45  ;;  %v495_v29 = vsub.f32 0.0, %v431_v10 }
 0x109   :  { %841 = vperm.xlu1 %2190, %v2872_v44   ;;  %v611_v61 = vmul.f32 1.442695, %v492_v55  ;;  %v4301_v55 = vperm.slane %v2630_v48, 6 }
 0x10b   :  { %862 = vperm.xlu0 %2189, %v2877_v9   ;;  %v2883_v43 = vpop.permute.xlu1 %718  ;;  %2300 = vpow2.f32 %v611_v61  ;;  %v370_v50 = vsub.f32 %v2630_v48, %v4301_v55  ;;  %v424_v61 = vmul.f32 %v2770_v39, %v2770_v39 }
 0x10c   :  { %811 = vperm.xlu2 %2188, %v2880_v46   ;;  %v2903_v4 = vpop.eup %2298  ;;  %2302 = vpow2.f32 %v625_v33 }
 0x10d   :  { %v2886_v2 = vpop.permute.xlu0 %736  ;;  %4300 = vst [vmem:[#allocation31_spill] sm:$0xff] %v2903_v4  ;;  %2304 = vpow2.f32 %v591_v22 }
 0x10e   :  { %v716_v45 = vpop.permute.xlu2 %715 }
 0x10f   :  { %v899_v19 = vperm.slane %v716_v45, %v2791_v15 }
 0x111   :  { %v900_v63 = vsel %vm890_vm1, %v899_v19, %v898_v7  ;;  %850 = vperm.xlu1 %2190, %v2892_v54   ;;  %v617_v7 = vmul.f32 1.442695, %v495_v29  ;;  %v434_v19 = vmul.f32 %v370_v50, %v370_v50  ;;  %v488_v29 = vsub.f32 0.0, %v424_v61 }
 0x112   :  { %v2900_v24 = vsel %vm989_vm4, %v900_v63, %v988_v17  ;;  %v485_v17 = vsub.f32 0.0, %v421_v21  ;;  %v2916_v63 = vpop.eup %2300 }
 0x113   :  { %871 = vperm.xlu0 %2189, %v2897_v35   ;;  %v2909_v42 = vpop.permute.xlu1 %724  ;;  %4302 = vst [vmem:[#allocation32_spill] sm:$0xff] %v2916_v63  ;;  %v2920_v55 = vpop.eup %2302  ;;  %2306 = vpow2.f32 %v617_v7  ;;  %v498_v33 = vsub.f32 0.0, %v434_v19  ;;  %v603_v9 = vmul.f32 1.442695, %v488_v29 }
 0x114   :  { %820 = vperm.xlu2 %2188, %v2903_v4   ;;  %v597_v10 = vmul.f32 1.442695, %v485_v17  ;;  %4303 = vst [vmem:[#allocation33_spill] sm:$0xff] %v2920_v55  ;;  %v2923_v35 = vpop.eup %2304 }
 0x115   :  { %v2912_v23 = vpop.permute.xlu0 %745  ;;  %4304 = vst [vmem:[#allocation34_spill] sm:$0xff] %v2923_v35  ;;  %v623_v39 = vmul.f32 1.442695, %v498_v33 }
 0x116   :  { %v2914_v45 = vpop.permute.xlu2 %721  ;;  %2308 = vpow2.f32 %v597_v10 }
 0x117   :  { %2310 = vpow2.f32 %v623_v39  ;;  %v50_v39 = vld [vmem:[%s4212_s1 + $0x78] sm:$0xff] }
 0x118   :  { %2312 = vpow2.f32 %v603_v9  ;;  %v66_v9 = vld [vmem:[%s4212_s1 + $0xf8] sm:$0xff]  ;;  %71 = vmatpush.msra.mxu0 %v50_v39 }
 0x119   :  { %859 = vperm.xlu1 %2190, %v2916_v63   ;;  %v2933_v17 = vpop.eup %2306  ;;  %v427_v63 = vmul.f32 %v2780_v20, %v2780_v20  ;;  %v430_v20 = vmul.f32 %v2785_v16, %v2785_v16  ;;  %100 = vmatpush.msra.mxu1 %v66_v9  ;;  %v64_v9 = vld [vmem:[%s4212_s1 + $0xe8] sm:$0xff] }
 0x11a   :  { %4305 = vst [vmem:[#allocation35_spill] sm:$0xff] %v2933_v17 }
 0x11b   :  { %880 = vperm.xlu0 %2189, %v2920_v55   ;;  %v2926_v22 = vpop.permute.xlu1 %733  ;;  %v491_v61 = vsub.f32 0.0, %v427_v63  ;;  %v65_v63 = vld [vmem:[%s4212_s1 + $0xf0] sm:$0xff]  ;;  %v494_v39 = vsub.f32 0.0, %v430_v20  ;;  %v62_v20 = vld [vmem:[%s4212_s1 + $0xd8] sm:$0xff] }
 0x11c   :  { %829 = vperm.xlu2 %2188, %v2923_v35   ;;  %v2938_v7 = vpop.eup %2308  ;;  %101 = vmatpush.msra.mxu1 %v65_v63 }
 0x11d   :  { %v2929_v21 = vpop.permute.xlu0 %754  ;;  %4306 = vst [vmem:[#allocation36_spill] sm:$0xff] %v2938_v7  ;;  %v2947_v55 = vpop.eup %2310  ;;  %v609_v29 = vmul.f32 1.442695, %v491_v61  ;;  %v48_v61 = vld [vmem:[%s4212_s1 + $0x68] sm:$0xff]  ;;  %v615_v63 = vmul.f32 1.442695, %v494_v39 }
 0x11e   :  { %v2931_v50 = vpop.permute.xlu2 %730  ;;  %4307 = vst [vmem:[#allocation37_spill] sm:$0xff] %v2947_v55  ;;  %v2964_v16 = vpop.eup %2312  ;;  %102 = vmatpush.msra.mxu1 %v64_v9  ;;  %v61_v9 = vld [vmem:[%s4212_s1 + $0xd0] sm:$0xff] }
 0x11f   :  { %4308 = vst [vmem:[#allocation38_spill] sm:$0xff] %v2964_v16  ;;  %2314 = vpow2.f32 %v609_v29  ;;  %v63_v29 = vld [vmem:[%s4212_s1 + $0xe0] sm:$0xff] }
 0x120   :  { %103 = vmatpush.msra.mxu1 %v63_v29  ;;  %2316 = vpow2.f32 %v615_v63 }
 0x121   :  { %868 = vperm.xlu1 %2190, %v2933_v17   ;;  %v49_v17 = vld [vmem:[%s4212_s1 + $0x70] sm:$0xff] }
 0x122   :  { %72 = vmatpush.msra.mxu0 %v49_v17  ;;  %v46_v17 = vld [vmem:[%s4212_s1 + $0x58] sm:$0xff]  ;;  %104 = vmatpush.msra.mxu1 %v62_v20  ;;  %v43_v20 = vld [vmem:[%s4212_s1 + $0x40] sm:$0xff] }
 0x123   :  { %v2941_v19 = vpop.permute.xlu1 %742 }
 0x124   :  { %838 = vperm.xlu2 %2188, %v2938_v7   ;;  %73 = vmatpush.msra.mxu0 %v48_v61  ;;  %v45_v61 = vld [vmem:[%s4212_s1 + $0x50] sm:$0xff] }
 0x125   :  { %v2943_v10 = vpop.permute.xlu0 %763  ;;  %v2999_v56 = vpop.eup %2314  ;;  %105 = vmatpush.msra.mxu1 %v61_v9  ;;  %v41_v9 = vld [vmem:[%s4212_s1 + $0x30] sm:$0xff] }
 0x126   :  { %v2945_v33 = vpop.permute.xlu2 %739  ;;  %4309 = vst [vmem:[#allocation39_spill] sm:$0xff] %v2999_v56 }
 0x129   :  { %877 = vperm.xlu1 %2190, %v2947_v55   ;;  %v47_v55 = vld [vmem:[%s4212_s1 + $0x60] sm:$0xff] }
 0x12a   :  { %74 = vmatpush.msra.mxu0 %v47_v55  ;;  %v44_v55 = vld [vmem:[%s4212_s1 + $0x48] sm:$0xff] }
 0x12b   :  { %v2970_v54 = vpop.permute.xlu1 %751 }
 0x12c   :  { %847 = vperm.xlu2 %2188, %v2964_v16   ;;  %v433_v16 = vmul.f32 %v2802_v34, %v2802_v34  ;;  %75 = vmatpush.msra.mxu0 %v46_v17  ;;  %v4310_v17 = vperm.slane %v2630_v48, 7 }
 0x12d   :  { %v2972_v44 = vpop.permute.xlu0 %772 }
 0x12e   :  { %v2980_v7 = vpop.permute.xlu2 %748  ;;  %76 = vmatpush.msra.mxu0 %v45_v61  ;;  %v497_v39 = vsub.f32 0.0, %v433_v16  ;;  %v372_v29 = vsub.f32 %v2630_v48, %v4310_v17  ;;  %v42_v48 = vld [vmem:[%s4212_s1 + $0x38] sm:$0xff]  ;;  %v59_v61 = vld [vmem:[%s4212_s1 + $0xc0] sm:$0xff]  ;;  %v40_v17 = vld [vmem:[%s4212_s1 + $0x28] sm:$0xff] }
 0x12f   :  { %v916_v46 = vperm.slane %v2980_v7, %v2773_v40  ;;  %v37_v7 = vld [vmem:[%s4212_s1 + $0x10] sm:$0xff] }
 0x130   :  { %77 = vmatpush.msra.mxu0 %v44_v55  ;;  %v621_v16 = vmul.f32 1.442695, %v497_v39  ;;  %v436_v63 = vmul.f32 %v372_v29, %v372_v29  ;;  %v3027_v55 = vpop.eup %2316  ;;  %v57_v29 = vld [vmem:[%s4212_s1 + $0xb0] sm:$0xff] }
 0x131   :  { %4311 = vst [vmem:[#allocation40_spill] sm:$0xff] %v3027_v55 }
 0x132   :  { %78 = vmatpush.msra.mxu0 %v43_v20  ;;  %2318 = vpow2.f32 %v621_v16  ;;  %v500_v20 = vsub.f32 0.0, %v436_v63  ;;  %v902_v63 = vperm.slane %v2914_v45, %v2791_v15  ;;  %v54_v45 = vld [vmem:[%s4212_s1 + $0x98] sm:$0xff] }
 0x133   :  { %v3005_v34 = vpop.permute.xlu1 %760 }
 0x134   :  { %856 = vperm.xlu2 %2188, %v2999_v56   ;;  %v60_v56 = vld [vmem:[%s4212_s1 + $0xc8] sm:$0xff]  ;;  %79 = vmatpush.msra.mxu0 %v42_v48  ;;  %v627_v16 = vmul.f32 1.442695, %v500_v20  ;;  %v901_v20 = vperm.slane %v2883_v43, %v2773_v40 }
 0x135   :  { %v3010_v5 = vpop.permute.xlu0 %781  ;;  %106 = vmatpush.msra.mxu1 %v60_v56  ;;  %v58_v56 = vld [vmem:[%s4212_s1 + $0xb8] sm:$0xff] }
 0x136   :  { %v758_v35 = vpop.permute.xlu2 %757  ;;  %80 = vmatpush.msra.mxu0 %v41_v9  ;;  %2320 = vpow2.f32 %v627_v16  ;;  %v52_v16 = vld [vmem:[%s4212_s1 + $0x88] sm:$0xff] }
 0x137   :  { %107 = vmatpush.msra.mxu1 %v59_v61  ;;  %v39_v61 = vld [vmem:[%s4212_s1 + $0x20] sm:$0xff]  ;;  %v920_v9 = vperm.slane %v758_v35, %v2791_v15  ;;  %v917_v35 = vperm.slane %v2970_v54, %v2791_v15  ;;  %v36_v54 = vld [vmem:[%s4212_s1 + $0x8] sm:$0xff] }
 0x138   :  { %81 = vmatpush.msra.mxu0 %v40_v17  ;;  %v55_v17 = vld [vmem:[%s4212_s1 + $0xa0] sm:$0xff] }
 0x139   :  { %108 = vmatpush.msra.mxu1 %v58_v56  ;;  %v38_v56 = vld [vmem:[%s4212_s1 + $0x18] sm:$0xff]  ;;  %v918_v43 = vsel %vm890_vm1, %v917_v35, %v916_v46 }
 0x13a   :  { %82 = vmatpush.msra.mxu0 %v39_v61  ;;  %v919_v61 = vperm.slane %v2929_v21, %v2773_v40  ;;  %v904_v21 = vperm.slane %v2909_v42, %v2773_v40  ;;  %v35_v42 = vld [vmem:[%s4212_s1] sm:$0xff] }
 0x13b   :  { %v3033_v39 = vpop.permute.xlu1 %769  ;;  %109 = vmatpush.msra.mxu1 %v57_v29  ;;  %v3063_v29 = vpop.eup %2318 }
 0x13c   :  { %865 = vperm.xlu2 %2188, %v3027_v55   ;;  %v56_v55 = vld [vmem:[%s4212_s1 + $0xa8] sm:$0xff]  ;;  %4312 = vst [vmem:[#allocation41_spill] sm:$0xff] %v3063_v29  ;;  %83 = vmatpush.msra.mxu0 %v38_v56  ;;  %v914_v56 = vperm.slane %v2912_v23, %v2791_v15  ;;  %v922_v23 = vperm.slane %v3005_v34, %v2773_v40 }
 0x13d   :  { %v3047_v4 = vpop.permute.xlu0 %790  ;;  %110 = vmatpush.msra.mxu1 %v56_v55  ;;  %v913_v55 = vperm.slane %v2941_v19, %v2773_v40  ;;  %v53_v19 = vld [vmem:[%s4212_s1 + $0x90] sm:$0xff] }
 0x13e   :  { %v767_v48 = vpop.permute.xlu2 %766  ;;  %84 = vmatpush.msra.mxu0 %v37_v7  ;;  %v928_v7 = vperm.slane %v2972_v44, %v2773_v40  ;;  %v2386_v44 = vld [vmem:[%s4211_s0] sm:$0xff] }
 0x13f   :  { %111 = vmatpush.msra.mxu1 %v55_v17  ;;  %v903_v17 = vsel %vm890_vm1, %v902_v63, %v901_v20  ;;  %v925_v41 = vperm.slane %v767_v48, %v2773_v40  ;;  %v915_v62 = vsel %vm890_vm1, %v914_v56, %v913_v55  ;;  %v907_v48 = vperm.slane %v2931_v50, %v2773_v40 }
 0x140   :  { %85 = vmatpush.msra.mxu0 %v36_v54  ;;  %v923_v63 = vperm.slane %v2943_v10, %v2791_v15  ;;  %v999_v34 = vsel %vm985_vm2, %v918_v43, %v915_v62  ;;  %v905_v50 = vperm.slane %v2865_v30, %v2791_v15  ;;  %v910_v10 = vperm.slane %v2886_v2, %v2773_v40  ;;  %v3130_v30 = vpop.eup %2320 }
 0x141   :  { %112 = vmatpush.msra.mxu1 %v54_v45  ;;  %v908_v62 = vperm.slane %v2926_v22, %v2791_v15  ;;  %v992_v2 = vsel %vm991_vm5, %v903_v17, %v2900_v24  ;;  %v2387_v24 = vld [vmem:[%s4211_s0 + $0x8] sm:$0xff]  ;;  %v932_v43 = vperm.slane %v3010_v5, %v2791_v15 }
 0x142   :  { %86 = vmatpush.msra.mxu0 %v35_v42  ;;  %v924_v22 = vsel %vm890_vm1, %v923_v63, %v922_v23  ;;  %v906_v54 = vsel %vm890_vm1, %v905_v50, %v904_v21 }
 0x143   :  { %v3077_v38 = vpop.permute.xlu1 %778  ;;  %113 = vmatpush.msra.mxu1 %v53_v19  ;;  %87 = vmatmul.f32.vlgmr.msra.gmra.mxu0 %v2386_v44  ;;  %v994_v17 = vsel %vm993_vm6, %v906_v54, %v992_v2 }
 0x144   :  { %874 = vperm.xlu2 %2188, %v3063_v29   ;;  %v921_v29 = vsel %vm890_vm1, %v920_v9, %v919_v61  ;;  %v911_v9 = vperm.slane %v2945_v33, %v2791_v15  ;;  %v51_v33 = vld [vmem:[%s4212_s1 + $0x80] sm:$0xff]  ;;  %v931_v20 = vperm.slane %v3077_v38, %v2773_v40 }
 0x145   :  { %v1000_v55 = vsel %vm987_vm3, %v921_v29, %v999_v34  ;;  %114 = vmatpush.msra.mxu1 %v52_v16  ;;  %v3122_v35 = vpop.permute.xlu0 %799  ;;  %v909_v29 = vsel %vm890_vm1, %v908_v62, %v907_v48 }
 0x146   :  { %v776_v14 = vpop.permute.xlu2 %775  ;;  %v1001_v45 = vsel %vm989_vm4, %v924_v22, %v1000_v55  ;;  %v912_v56 = vsel %vm890_vm1, %v911_v9, %v910_v10  ;;  %v996_v16 = vsel %vm995_vm7, %v909_v29, %v994_v17  ;;  %v933_v21 = vsel %vm890_vm1, %v932_v43, %v931_v20  ;;  %v2389_v10 = vld [vmem:[%s4211_s0 + $0x18] sm:$0xff] }
 0x147   :  { %v929_v46 = vperm.slane %v776_v14, %v2791_v15  ;;  %v926_v14 = vperm.slane %v3033_v39, %v2791_v15  ;;  %115 = vmatpush.msra.mxu1 %v51_v33  ;;  %v998_v48 = vsel %vm4266_vm8, %v912_v56, %v996_v16  ;;  %v2391_v33 = vld [vmem:[%s4211_s0 + $0x28] sm:$0xff]  ;;  %v937_v56 = vperm.slane %v3047_v4, %v2773_v40 }
 0x148   :  { %116 = vmatmul.f32.vlgmr.msra.gmra.mxu1 %v2387_v24  ;;  %v1025_v9 = vsel %vm4265_vm9, %v998_v48, 0.0 }
 0x149   :  { %v927_v39 = vsel %vm890_vm1, %v926_v14, %v925_v41  ;;  %v930_v41 = vsel %vm890_vm1, %v929_v46, %v928_v7  ;;  %v2388_v14 = vld [vmem:[%s4211_s0 + $0x10] sm:$0xff] }
 0x14a   :  { %v1002_v19 = vsel %vm991_vm5, %v927_v39, %v1001_v45  ;;  %v2390_v39 = vld [vmem:[%s4211_s0 + $0x20] sm:$0xff]  ;;  %v2393_v45 = vld [vmem:[%s4211_s0 + $0x38] sm:$0xff] }
 0x14b   :  { %v788_v61 = vpop.permute.xlu1 %787  ;;  %v1003_v23 = vsel %vm993_vm6, %v930_v41, %v1002_v19  ;;  %90 = vmatmul.f32.gmra.mxu0 %v2388_v14  ;;  %v2392_v41 = vld [vmem:[%s4211_s0 + $0x30] sm:$0xff] }
 0x14c   :  { %883 = vperm.xlu2 %2188, %v3130_v30   ;;  %v935_v46 = vperm.slane %v788_v61, %v2791_v15  ;;  %v1004_v5 = vsel %vm995_vm7, %v933_v21, %v1003_v23 }
 0x14d   :  { %v809_v55 = vpop.permute.xlu0 %808 }
 0x14e   :  { %v785_v38 = vpop.permute.xlu2 %784 }
 0x14f   :  { %v934_v42 = vperm.slane %v785_v38, %v2773_v40 }
 0x150   :  { %119 = vmatmul.f32.gmra.mxu1 %v2389_v10 }
 0x151   :  { %v936_v63 = vsel %vm890_vm1, %v935_v46, %v934_v42  ;;  %v941_v46 = vperm.slane %v3122_v35, %v2791_v15  ;;  %v946_v42 = vperm.slane %v809_v55, %v2773_v40 }
 0x152   :  { %v1005_v34 = vsel %vm4266_vm8, %v936_v63, %v1004_v5 }
 0x153   :  { %v1028_v7 = vsel %vm4265_vm9, %v1005_v34, 0.0  ;;  %v797_v50 = vpop.permute.xlu1 %796  ;;  %1026 = vadd.xlane.f32.xlu1 %v1025_v9  ;;  %93 = vmatmul.f32.gmra.mxu0 %v2390_v39 }
 0x154   :  { %1029 = vadd.xlane.f32.xlu0 %v1028_v7  ;;  %v940_v43 = vperm.slane %v797_v50, %v2773_v40 }
 0x155   :  { %v818_v2 = vpop.permute.xlu0 %817 }
 0x156   :  { %v794_v62 = vpop.permute.xlu2 %793  ;;  %v942_v48 = vsel %vm890_vm1, %v941_v46, %v940_v43  ;;  %v950_v55 = vperm.slane %v818_v2, %v2791_v15 }
 0x157   :  { %v938_v24 = vperm.slane %v794_v62, %v2791_v15 }
 0x158   :  { %122 = vmatmul.f32.gmra.mxu1 %v2391_v33 }
 0x159   :  { %v939_v16 = vsel %vm890_vm1, %v938_v24, %v937_v56 }
 0x15a   :  { %v1006_v34 = vsel %vm985_vm2, %v942_v48, %v939_v16 }
 0x15b   :  { %v806_v44 = vpop.permute.xlu1 %805  ;;  %96 = vmatmul.f32.gmra.mxu0 %v2392_v41 }
 0x15c   :  { %v944_v23 = vperm.slane %v806_v44, %v2791_v15 }
 0x15d   :  { %v827_v61 = vpop.permute.xlu0 %826 }
 0x15e   :  { %v803_v22 = vpop.permute.xlu2 %802  ;;  %v955_v44 = vperm.slane %v827_v61, %v2773_v40 }
 0x15f   :  { %v943_v19 = vperm.slane %v803_v22, %v2773_v40 }
 0x160   :  { %125 = vmatmul.f32.gmra.mxu1 %v2393_v45 }
 0x161   :  { %v945_v21 = vsel %vm890_vm1, %v944_v23, %v943_v19 }
 0x162   :  { %v1007_v9 = vsel %vm987_vm3, %v945_v21, %v1006_v34 }
 0x163   :  { %v815_v29 = vpop.permute.xlu1 %814 }
 0x164   :  { %v949_v14 = vperm.slane %v815_v29, %v2773_v40 }
 0x165   :  { %v836_v63 = vpop.permute.xlu0 %835 }
 0x166   :  { %v812_v20 = vpop.permute.xlu2 %811  ;;  %v951_v33 = vsel %vm890_vm1, %v950_v55, %v949_v14  ;;  %v959_v41 = vperm.slane %v836_v63, %v2791_v15 }
 0x167   :  { %v947_v38 = vperm.slane %v812_v20, %v2791_v15 }
 0x169   :  { %v948_v4 = vsel %vm890_vm1, %v947_v38, %v946_v42 }
 0x16a   :  { %v1008_v50 = vsel %vm989_vm4, %v948_v4, %v1007_v9 }
 0x16b   :  { %v824_v54 = vpop.permute.xlu1 %823  ;;  %v1009_v29 = vsel %vm991_vm5, %v951_v33, %v1008_v50 }
 0x16c   :  { %v953_v35 = vperm.slane %v824_v54, %v2791_v15 }
 0x16d   :  { %v845_v19 = vpop.permute.xlu0 %844 }
 0x16e   :  { %v821_v17 = vpop.permute.xlu2 %820 }
 0x16f   :  { %v952_v5 = vperm.slane %v821_v17, %v2773_v40 }
 0x171   :  { %v954_v10 = vsel %vm890_vm1, %v953_v35, %v952_v5  ;;  %v964_v5 = vperm.slane %v845_v19, %v2773_v40 }
 0x172   :  { %v1010_v2 = vsel %vm993_vm6, %v954_v10, %v1009_v29 }
 0x173   :  { %v833_v7 = vpop.permute.xlu1 %832 }
 0x174   :  { %v958_v62 = vperm.slane %v833_v7, %v2773_v40 }
 0x175   :  { %v854_v17 = vpop.permute.xlu0 %853 }
 0x176   :  { %v830_v39 = vpop.permute.xlu2 %829  ;;  %v960_v20 = vsel %vm890_vm1, %v959_v41, %v958_v62 }
 0x177   :  { %v956_v22 = vperm.slane %v830_v39, %v2791_v15  ;;  %v968_v39 = vperm.slane %v854_v17, %v2791_v15 }
 0x179   :  { %v957_v45 = vsel %vm890_vm1, %v956_v22, %v955_v44 }
 0x17a   :  { %v1011_v24 = vsel %vm995_vm7, %v957_v45, %v1010_v2 }
 0x17b   :  { %v1012_v54 = vsel %vm4266_vm8, %v960_v20, %v1011_v24  ;;  %v842_v61 = vpop.permute.xlu1 %841 }
 0x17c   :  { %v1031_v56 = vsel %vm4265_vm9, %v1012_v54, 0.0  ;;  %v962_v14 = vperm.slane %v842_v61, %v2791_v15 }
 0x17d   :  { %1032 = vadd.xlane.f32.xlu2 %v1031_v56  ;;  %v863_v16 = vpop.permute.xlu0 %862 }
 0x17e   :  { %v839_v43 = vpop.permute.xlu2 %838  ;;  %v973_v44 = vperm.slane %v863_v16, %v2773_v40 }
 0x17f   :  { %v961_v34 = vperm.slane %v839_v43, %v2773_v40 }
 0x181   :  { %v963_v10 = vsel %vm890_vm1, %v962_v14, %v961_v34  ;;  %v140_v34 = vld [vmem:[%s4214_s3 + $0x38] sm:$0xff]  ;;  %v137_v14 = vld [vmem:[%s4214_s3 + $0x20] sm:$0xff] }
 0x182   :  { %201 = vmatpush.msra.mxu3 %v140_v34 }
 0x183   :  { %v851_v38 = vpop.permute.xlu1 %850 }
 0x184   :  { %v967_v7 = vperm.slane %v851_v38, %v2773_v40 }
 0x185   :  { %v872_v63 = vpop.permute.xlu0 %871 }
 0x186   :  { %v848_v23 = vpop.permute.xlu2 %847  ;;  %v969_v29 = vsel %vm890_vm1, %v968_v39, %v967_v7  ;;  %v977_v56 = vperm.slane %v872_v63, %v2791_v15  ;;  %v133_v39 = vld [vmem:[%s4214_s3] sm:$0xff] }
 0x187   :  { %v965_v4 = vperm.slane %v848_v23, %v2791_v15 }
 0x189   :  { %v966_v9 = vsel %vm890_vm1, %v965_v4, %v964_v5  ;;  %v139_v5 = vld [vmem:[%s4214_s3 + $0x30] sm:$0xff] }
 0x18a   :  { %v1013_v33 = vsel %vm985_vm2, %v966_v9, %v963_v10  ;;  %172 = vmatpush.msra.mxu2 %v139_v5  ;;  %v138_v9 = vld [vmem:[%s4214_s3 + $0x28] sm:$0xff] }
 0x18b   :  { %v860_v46 = vpop.permute.xlu1 %859  ;;  %v1014_v20 = vsel %vm987_vm3, %v969_v29, %v1013_v33  ;;  %202 = vmatpush.msra.mxu3 %v138_v9 }
 0x18c   :  { %v971_v62 = vperm.slane %v860_v46, %v2791_v15  ;;  %173 = vmatpush.msra.mxu2 %v137_v14 }
 0x18d   :  { %v881_v19 = vpop.permute.xlu0 %880 }
 0x18e   :  { %v857_v42 = vpop.permute.xlu2 %856  ;;  %v982_v23 = vperm.slane %v881_v19, %v2773_v40 }
 0x18f   :  { %v970_v35 = vperm.slane %v857_v42, %v2773_v40 }
 0x191   :  { %v972_v22 = vsel %vm890_vm1, %v971_v62, %v970_v35  ;;  %v135_v35 = vld [vmem:[%s4214_s3 + $0x10] sm:$0xff] }
 0x192   :  { %v1015_v54 = vsel %vm989_vm4, %v972_v22, %v1014_v20  ;;  %174 = vmatpush.msra.mxu2 %v135_v35  ;;  %v3280_v22 = vld [vmem:[%s4213_s2] ss:$0 sm:$0xff] }
 0x193   :  { %v869_v48 = vpop.permute.xlu1 %868 }
 0x194   :  { %v976_v24 = vperm.slane %v869_v48, %v2773_v40  ;;  %175 = vmatpush.msra.mxu2 %v133_v39 }
 0x196   :  { %v866_v21 = vpop.permute.xlu2 %865  ;;  %v978_v46 = vsel %vm890_vm1, %v977_v56, %v976_v24 }
 0x197   :  { %v974_v55 = vperm.slane %v866_v21, %v2791_v15 }
 0x199   :  { %v975_v45 = vsel %vm890_vm1, %v974_v55, %v973_v44  ;;  %v136_v55 = vld [vmem:[%s4214_s3 + $0x18] sm:$0xff]  ;;  %v134_v44 = vld [vmem:[%s4214_s3 + $0x8] sm:$0xff] }
 0x19a   :  { %v1016_v43 = vsel %vm991_vm5, %v975_v45, %v1015_v54  ;;  %203 = vmatpush.msra.mxu3 %v136_v55 }
 0x19b   :  { %v878_v41 = vpop.permute.xlu1 %877  ;;  %v1017_v16 = vsel %vm993_vm6, %v978_v46, %v1016_v43 }
 0x19c   :  { %v980_v61 = vperm.slane %v878_v41, %v2791_v15  ;;  %204 = vmatpush.msra.mxu3 %v134_v44 }
 0x19e   :  { %v875_v50 = vpop.permute.xlu2 %874 }
 0x19f   :  { %v979_v2 = vperm.slane %v875_v50, %v2773_v40 }
 0x1a1   :  { %v981_v38 = vsel %vm890_vm1, %v980_v61, %v979_v2 }
 0x1a2   :  { %v1018_v48 = vsel %vm995_vm7, %v981_v38, %v1017_v16 }
 0x1a6   :  { %v884_v17 = vpop.permute.xlu2 %883 }
 0x1a7   :  { %v983_v42 = vperm.slane %v884_v17, %v2791_v15 }
 0x1a9   :  { %v984_v21 = vsel %vm890_vm1, %v983_v42, %v982_v23 }
 0x1aa   :  { %v1019_v4 = vsel %vm4266_vm8, %v984_v21, %v1018_v48 }
 0x1ab   :  { %v1034_v63 = vsel %vm4265_vm9, %v1019_v4, 0.0 }
 0x1ac   :  { %1035 = vadd.xlane.f32.xlu1 %v1034_v63 }
 0x1c0   :  { %v88_v41 = vpop.f32.mrf.mxu0 }
 0x1c1   :  { %v89_v2 = vadd.f32 %v3280_v22, %v88_v41 }
 0x1c5   :  { %v117_v56 = vpop.f32.mrf.mxu1 }
 0x1c6   :  { %v1027_v7 = vpop.xlane.xlu1 %1026  ;;  %v118_v63 = vadd.f32 %v117_v56, %v89_v2 }
 0x1c7   :  { %v1041_v50 = vperm.slane %v1027_v7, 0  ;;  %v3263_v10 = vperm.slane %v1027_v7, 1  ;;  %v3265_v62 = vperm.slane %v1027_v7, 2  ;;  %v3273_v33 = vperm.slane %v1027_v7, 3 }
 0x1c8   :  { %v3283_v29 = vperm.slane %v1027_v7, 4  ;;  %v3286_v24 = vperm.slane %v1027_v7, 5  ;;  %v3288_v54 = vperm.slane %v1027_v7, 6  ;;  %v3290_v19 = vperm.slane %v1027_v7, 7 }
 0x1c9   :  { %2322 = vrcp.f32 %v1041_v50  ;;  %vm1110_vm11 = vweird.f32 %v1041_v50  ;;  %v1114_v38 = vand.u32 2147483647, %v1041_v50  ;;  %v1116_v17 = vand.u32 2147483648, %v1041_v50 }
 0x1ca   :  { %2324 = vrcp.f32 %v3263_v10  ;;  %vm1126_vm12 = vweird.f32 %v3263_v10  ;;  %v1130_v48 = vand.u32 2147483647, %v3263_v10  ;;  %v1132_v4 = vand.u32 2147483648, %v3263_v10 }
 0x1cb   :  { %2326 = vrcp.f32 %v3265_v62  ;;  %v129_v9 = vmax.f32 %v118_v63, 0.0  ;;  %vm3306_vm15 = vcmp.eq.f32.partialorder %v1114_v38, 8.507059e+37  ;;  %v1117_v39 = vor.u32 1.1754944e-38, %v1116_v17  ;;  %v91_v38 = vpop.f32.mrf.mxu0 }
 0x1cc   :  { %2328 = vrcp.f32 %v3273_v33  ;;  %vm3316_vm9 = vcmp.eq.f32.partialorder %v1130_v48, 8.507059e+37  ;;  %v1133_v56 = vor.u32 1.1754944e-38, %v1132_v4  ;;  %vm1142_vm8 = vweird.f32 %v3265_v62 }
 0x1cd   :  { %2330 = vrcp.f32 %v3283_v29  ;;  %2167 = vmatmul.msk.f32.vlgmr.msra.gmra.mxu2 %vm147_vm10, %v129_v9  ;;  %2171 = vmatmul.msk.f32.vlgmr.msra.gmra.mxu3 %vm147_vm10, %v129_v9  ;;  %v1146_v4 = vand.u32 2147483647, %v3265_v62  ;;  %v1148_v63 = vand.u32 2147483648, %v3265_v62 }
 0x1ce   :  { %2332 = vrcp.f32 %v3286_v24 }
 0x1cf   :  { %v2323_v45 = vpop.eup %2322  ;;  %2334 = vrcp.f32 %v3288_v54 }
 0x1d0   :  { %v2325_v20 = vpop.eup %2324  ;;  %v1106_v61 = vmul.f32 %v2323_v45, %v1041_v50  ;;  %vm1111_vm13 = vweird.f32 %v2323_v45  ;;  %v3325_v50 = vpop.xlane.xlu0 %1029  ;;  %2336 = vrcp.f32 %v3290_v19 }
 0x1d1   :  { %v3292_v43 = vpop.eup %2326  ;;  %v1122_v23 = vmul.f32 %v2325_v20, %v3263_v10  ;;  %vm1127_vm14 = vweird.f32 %v2325_v20  ;;  %vm3312_vm0 = vmor %vm1110_vm11, %vm1111_vm13  ;;  %v3347_v9 = vperm.slane %v3325_v50, 0 }
 0x1d2   :  { %v3295_v46 = vpop.eup %2328  ;;  %v1107_v42 = vsub.f32 1.0, %v1106_v61  ;;  %v1138_v16 = vmul.f32 %v3292_v43, %v3265_v62  ;;  %vm1128_vm11 = vmor %vm1126_vm12, %vm1127_vm14  ;;  %vm1143_vm13 = vweird.f32 %v3292_v43  ;;  %v1164_v61 = vand.u32 2147483648, %v3273_v33 }
 0x1d3   :  { %v1123_v21 = vsub.f32 1.0, %v1122_v23  ;;  %v1154_v35 = vmul.f32 %v3295_v46, %v3273_v33  ;;  %v3323_v17 = vpop.eup %2330  ;;  %vm1144_vm12 = vmor %vm1142_vm8, %vm1143_vm13  ;;  %2338 = vrcp.f32 %v3347_v9  ;;  %vm1158_vm8 = vweird.f32 %v3273_v33 }
 0x1d4   :  { %v1108_v5 = vmul.f32 %v2323_v45, %v1107_v42  ;;  %v1139_v34 = vsub.f32 1.0, %v1138_v16  ;;  %v1170_v55 = vmul.f32 %v3323_v17, %v3283_v29  ;;  %vm1159_vm14 = vweird.f32 %v3295_v46 }
 0x1d5   :  { %v1124_v14 = vmul.f32 %v2325_v20, %v1123_v21  ;;  %v1155_v16 = vsub.f32 1.0, %v1154_v35  ;;  %v120_v35 = vpop.f32.mrf.mxu1 }
 0x1d6   :  { %v1109_v7 = vadd.f32 %v2323_v45, %v1108_v5  ;;  %v1140_v44 = vmul.f32 %v3292_v43, %v1139_v34  ;;  %v3338_v5 = vpop.eup %2332  ;;  %v1171_v62 = vsub.f32 1.0, %v1170_v55 }
 0x1d7   :  { %v1125_v2 = vadd.f32 %v2325_v20, %v1124_v14  ;;  %v92_v14 = vadd.f32 %v3280_v22, %v91_v38 }
 0x1d8   :  { %v1113_v23 = vsel %vm3312_vm0, %v2323_v45, %v1109_v7  ;;  %v1141_v42 = vadd.f32 %v3292_v43, %v1140_v44  ;;  %v1149_v7 = vor.u32 1.1754944e-38, %v1148_v63  ;;  %v1186_v44 = vmul.f32 %v3338_v5, %v3286_v24  ;;  %vm3381_vm0 = vmor %vm1158_vm8, %vm1159_vm14 }
 0x1d9   :  { %v1118_v21 = vsel %vm3306_vm15, %v1117_v39, %v1113_v23  ;;  %v1129_v48 = vsel %vm1128_vm11, %v2325_v20, %v1125_v2  ;;  %v121_v39 = vadd.f32 %v120_v35, %v92_v14  ;;  %v3363_v2 = vpop.eup %2334  ;;  %vm1175_vm15 = vweird.f32 %v3323_v17 }
 0x1da   :  { %v1120_v45 = vmul.f32 %v2541_v12, %v1118_v21  ;;  %v1119_v10 = vmul.f32 %v2526_v58, %v1118_v21  ;;  %v1134_v34 = vsel %vm3316_vm9, %v1133_v56, %v1129_v48  ;;  %v1145_v58 = vsel %vm1144_vm12, %v3292_v43, %v1141_v42  ;;  %v3368_v23 = vpop.eup %2336 }
 0x1db   :  { %v1135_v20 = vmul.f32 %v2524_v57, %v1134_v34  ;;  %v1156_v12 = vmul.f32 %v3295_v46, %v1155_v16  ;;  %vm1147_vm9 = vcmp.eq.f32.partialorder %v1146_v4, 8.507059e+37  ;;  %v130_v43 = vmax.f32 %v121_v39, 0.0 }
 0x1dc   :  { %1653 = vperm.xlu0 %2189, %v1120_v45   ;;  %1650 = vperm.xlu2 %2188, %v1119_v10   ;;  %v1150_v57 = vsel %vm1147_vm9, %v1149_v7, %v1145_v58  ;;  %v1172_v56 = vmul.f32 %v3323_v17, %v1171_v62  ;;  %v1187_v38 = vsub.f32 1.0, %v1186_v44  ;;  %v1136_v42 = vmul.f32 %v2534_v6, %v1134_v34  ;;  %v3396_v10 = vpop.eup %2338 }
 0x1dd   :  { %1656 = vperm.xlu1 %2190, %v1135_v20   ;;  %v1157_v41 = vadd.f32 %v3295_v46, %v1156_v12  ;;  %v1151_v16 = vmul.f32 %v2558_v32, %v1150_v57  ;;  %v1162_v21 = vand.u32 2147483647, %v3273_v33  ;;  %v1180_v48 = vand.u32 2147483648, %v3283_v29  ;;  %2168 = vmatmul.msk.f32.gmra.mxu2 %vm147_vm10, %v130_v43 }
 0x1de   :  { %2172 = vmatmul.msk.f32.gmra.mxu3 %vm147_vm10, %v130_v43  ;;  %v1152_v4 = vmul.f32 %v2578_v52, %v1150_v57  ;;  %v1173_v6 = vadd.f32 %v3323_v17, %v1172_v56  ;;  %vm1174_vm11 = vweird.f32 %v3283_v29  ;;  %v1178_v32 = vand.u32 2147483647, %v3283_v29 }
 0x1df   :  { %v1161_v52 = vsel %vm3381_vm0, %v3295_v46, %v1157_v41  ;;  %vm1176_vm13 = vmor %vm1174_vm11, %vm1175_vm15  ;;  %v1188_v33 = vmul.f32 %v3338_v5, %v1187_v38  ;;  %v1202_v45 = vmul.f32 %v3363_v2, %v3288_v54  ;;  %v1165_v34 = vor.u32 1.1754944e-38, %v1164_v61 }
 0x1e0   :  { %v1177_v29 = vsel %vm1176_vm13, %v3323_v17, %v1173_v6  ;;  %v1218_v14 = vmul.f32 %v3368_v23, %v3290_v19  ;;  %vm1163_vm12 = vcmp.eq.f32.partialorder %v1162_v21, 8.507059e+37  ;;  %v1181_v20 = vor.u32 1.1754944e-38, %v1180_v48 }
 0x1e1   :  { %v3402_v46 = vperm.slane %v3325_v50, 1  ;;  %v3405_v35 = vperm.slane %v3325_v50, 2  ;;  %v1166_v58 = vsel %vm1163_vm12, %v1165_v34, %v1161_v52  ;;  %vm1179_vm9 = vcmp.eq.f32.partialorder %v1178_v32, 8.507059e+37 }
 0x1e2   :  { %v1182_v12 = vsel %vm1179_vm9, %v1181_v20, %v1177_v29  ;;  %v1189_v7 = vadd.f32 %v3338_v5, %v1188_v33  ;;  %vm1191_vm8 = vweird.f32 %v3338_v5  ;;  %v1203_v55 = vsub.f32 1.0, %v1202_v45 }
 0x1e3   :  { %v1196_v17 = vand.u32 2147483648, %v3286_v24  ;;  %v1219_v39 = vsub.f32 1.0, %v1218_v14  ;;  %v1167_v57 = vmul.f32 %v2600_v13, %v1166_v58  ;;  %v1168_v62 = vmul.f32 %v2619_v37, %v1166_v58 }
 0x1e4   :  { %1659 = vperm.xlu0 %2189, %v1136_v42   ;;  %1662 = vperm.xlu2 %2188, %v1151_v16   ;;  %vm1190_vm14 = vweird.f32 %v3286_v24  ;;  %v1194_v44 = vand.u32 2147483647, %v3286_v24  ;;  %2340 = vrcp.f32 %v3402_v46  ;;  %v1183_v41 = vmul.f32 %v2553_v26, %v1182_v12 }
 0x1e5   :  { %1665 = vperm.xlu1 %2190, %v1152_v4   ;;  %vm1192_vm15 = vmor %vm1190_vm14, %vm1191_vm8  ;;  %2342 = vrcp.f32 %v3405_v35  ;;  %v1204_v61 = vmul.f32 %v3363_v2, %v1203_v55  ;;  %v1234_v13 = vmul.f32 %v3396_v10, %v3347_v9  ;;  %v1197_v37 = vor.u32 1.1754944e-38, %v1196_v17 }
 0x1e6   :  { %v1193_v43 = vsel %vm1192_vm15, %v3338_v5, %v1189_v7  ;;  %v1220_v24 = vmul.f32 %v3368_v23, %v1219_v39  ;;  %vm1195_vm0 = vcmp.eq.f32.partialorder %v1194_v44, 8.507059e+37  ;;  %v3423_v56 = vperm.slane %v3325_v50, 3 }
 0x1e7   :  { %v1198_v26 = vsel %vm1195_vm0, %v1197_v37, %v1193_v43  ;;  %v1205_v38 = vadd.f32 %v3363_v2, %v1204_v61  ;;  %vm1207_vm11 = vweird.f32 %v3363_v2  ;;  %v1235_v42 = vsub.f32 1.0, %v1234_v13 }
 0x1e8   :  { %vm1206_vm13 = vweird.f32 %v3288_v54  ;;  %v1212_v16 = vand.u32 2147483648, %v3288_v54  ;;  %v1221_v21 = vadd.f32 %v3368_v23, %v1220_v24  ;;  %vm1223_vm12 = vweird.f32 %v3368_v23 }
 0x1e9   :  { %v1184_v4 = vmul.f32 %v2639_v0, %v1182_v12  ;;  %v1199_v63 = vmul.f32 %v2568_v47, %v1198_v26  ;;  %v1210_v6 = vand.u32 2147483647, %v3288_v54  ;;  %v1228_v32 = vand.u32 2147483648, %v3290_v19  ;;  %vm3441_vm9 = vmor %vm1206_vm13, %vm1207_vm11 }
 0x1ea   :  { %v3427_v5 = vpop.eup %2340  ;;  %2344 = vrcp.f32 %v3423_v56  ;;  %v1200_v52 = vmul.f32 %v2538_v11, %v1198_v26  ;;  %vm1222_vm8 = vweird.f32 %v3290_v19  ;;  %v1226_v45 = vand.u32 2147483647, %v3290_v19 }
 0x1eb   :  { %v3433_v48 = vpop.eup %2342  ;;  %v1209_v47 = vsel %vm3441_vm9, %v3363_v2, %v1205_v38  ;;  %vm1224_vm14 = vmor %vm1222_vm8, %vm1223_vm12  ;;  %v1236_v0 = vmul.f32 %v3396_v10, %v1235_v42  ;;  %v1250_v11 = vmul.f32 %v3427_v5, %v3402_v46  ;;  %v1213_v54 = vor.u32 1.1754944e-38, %v1212_v16 }
 0x1ec   :  { %1668 = vperm.xlu0 %2189, %v1167_v57   ;;  %1671 = vperm.xlu2 %2188, %v1168_v62   ;;  %v1225_v34 = vsel %vm1224_vm14, %v3368_v23, %v1221_v21  ;;  %v1266_v29 = vmul.f32 %v3433_v48, %v3405_v35  ;;  %vm1211_vm15 = vcmp.eq.f32.partialorder %v1210_v6, 8.507059e+37  ;;  %v1229_v19 = vor.u32 1.1754944e-38, %v1228_v32 }
 0x1ed   :  { %1674 = vperm.xlu1 %2190, %v1183_v41   ;;  %v3457_v14 = vperm.slane %v3325_v50, 4  ;;  %v3460_v2 = vperm.slane %v3325_v50, 5  ;;  %v1214_v20 = vsel %vm1211_vm15, %v1213_v54, %v1209_v47  ;;  %vm1227_vm0 = vcmp.eq.f32.partialorder %v1226_v45, 8.507059e+37 }
 0x1ee   :  { %v1230_v58 = vsel %vm1227_vm0, %v1229_v19, %v1225_v34  ;;  %v1237_v12 = vadd.f32 %v3396_v10, %v1236_v0  ;;  %vm1239_vm11 = vweird.f32 %v3396_v10  ;;  %v1251_v7 = vsub.f32 1.0, %v1250_v11 }
 0x1ef   :  { %v1244_v55 = vand.u32 2147483648, %v3347_v9  ;;  %v1267_v17 = vsub.f32 1.0, %v1266_v29  ;;  %v1215_v39 = vmul.f32 %v2656_v25, %v1214_v20  ;;  %v1216_v57 = vmul.f32 %v2592_v3, %v1214_v20 }
 0x1f0   :  { %v3464_v23 = vpop.eup %2344  ;;  %vm1238_vm13 = vweird.f32 %v3347_v9  ;;  %v1242_v62 = vand.u32 2147483647, %v3347_v9  ;;  %2346 = vrcp.f32 %v3457_v14  ;;  %v1231_v44 = vmul.f32 %v2555_v31, %v1230_v58  ;;  %v3504_v32 = vpop.xlane.xlu2 %1032 }
 0x1f1   :  { %vm1240_vm12 = vmor %vm1238_vm13, %vm1239_vm11  ;;  %2348 = vrcp.f32 %v3460_v2  ;;  %v1252_v43 = vmul.f32 %v3427_v5, %v1251_v7  ;;  %v1282_v3 = vmul.f32 %v3464_v23, %v3423_v56  ;;  %v1245_v25 = vor.u32 1.1754944e-38, %v1244_v55 }
 0x1f2   :  { %v1241_v41 = vsel %vm1240_vm12, %v3396_v10, %v1237_v12  ;;  %v1268_v9 = vmul.f32 %v3433_v48, %v1267_v17  ;;  %vm1243_vm9 = vcmp.eq.f32.partialorder %v1242_v62, 8.507059e+37  ;;  %v3480_v61 = vperm.slane %v3325_v50, 6 }
 0x1f3   :  { %v1246_v31 = vsel %vm1243_vm9, %v1245_v25, %v1241_v41  ;;  %v1253_v13 = vadd.f32 %v3427_v5, %v1252_v43  ;;  %vm1255_vm8 = vweird.f32 %v3427_v5  ;;  %v1283_v37 = vsub.f32 1.0, %v1282_v3 }
 0x1f4   :  { %1677 = vperm.xlu0 %2189, %v1184_v4   ;;  %1680 = vperm.xlu2 %2188, %v1199_v63   ;;  %v1232_v24 = vmul.f32 %v2672_v60, %v1230_v58  ;;  %v1260_v26 = vand.u32 2147483648, %v3402_v46  ;;  %v1269_v38 = vadd.f32 %v3433_v48, %v1268_v9  ;;  %vm1271_vm14 = vweird.f32 %v3433_v48 }
 0x1f5   :  { %1683 = vperm.xlu1 %2190, %v1200_v52   ;;  %v1247_v16 = vmul.f32 %v2611_v28, %v1246_v31  ;;  %vm1254_vm15 = vweird.f32 %v3402_v46  ;;  %v1258_v21 = vand.u32 2147483647, %v3402_v46  ;;  %v1276_v4 = vand.u32 2147483648, %v3405_v35 }
 0x1f6   :  { %v3484_v10 = vpop.eup %2346  ;;  %2350 = vrcp.f32 %v3480_v61  ;;  %v1248_v60 = vmul.f32 %v2575_v51, %v1246_v31  ;;  %vm3498_vm0 = vmor %vm1254_vm15, %vm1255_vm8  ;;  %vm1270_vm11 = vweird.f32 %v3405_v35  ;;  %v1274_v6 = vand.u32 2147483647, %v3405_v35 }
 0x1f7   :  { %v3490_v42 = vpop.eup %2348  ;;  %v1257_v28 = vsel %vm3498_vm0, %v3427_v5, %v1253_v13  ;;  %vm1272_vm13 = vmor %vm1270_vm11, %vm1271_vm14  ;;  %v1284_v51 = vmul.f32 %v3464_v23, %v1283_v37  ;;  %v1298_v46 = vmul.f32 %v3484_v10, %v3457_v14  ;;  %v1261_v52 = vor.u32 1.1754944e-38, %v1260_v26 }
 0x1f8   :  { %v1273_v35 = vsel %vm1272_vm13, %v3433_v48, %v1269_v38  ;;  %v1314_v33 = vmul.f32 %v3490_v42, %v3460_v2  ;;  %vm1259_vm12 = vcmp.eq.f32.partialorder %v1258_v21, 8.507059e+37  ;;  %v1277_v45 = vor.u32 1.1754944e-38, %v1276_v4  ;;  %v94_v38 = vpop.f32.mrf.mxu0 }
 0x1f9   :  { %v3518_v47 = vperm.slane %v3325_v50, 7  ;;  %v3521_v5 = vperm.slane %v3504_v32, 0  ;;  %v1262_v0 = vsel %vm1259_vm12, %v1261_v52, %v1257_v28  ;;  %vm1275_vm9 = vcmp.eq.f32.partialorder %v1274_v6, 8.507059e+37 }
 0x1fa   :  { %v1278_v11 = vsel %vm1275_vm9, %v1277_v45, %v1273_v35  ;;  %v1285_v54 = vadd.f32 %v3464_v23, %v1284_v51  ;;  %vm1287_vm8 = vweird.f32 %v3464_v23  ;;  %v1299_v34 = vsub.f32 1.0, %v1298_v46 }
 0x1fb   :  { %v1292_v29 = vand.u32 2147483648, %v3423_v56  ;;  %v1315_v19 = vsub.f32 1.0, %v1314_v33  ;;  %v1263_v20 = vmul.f32 %v2688_v27, %v1262_v0  ;;  %v1264_v50 = vmul.f32 %v2633_v59, %v1262_v0 }
 0x1fc   :  { %1686 = vperm.xlu0 %2189, %v1215_v39   ;;  %1689 = vperm.xlu2 %2188, %v1216_v57   ;;  %v3525_v48 = vpop.eup %2350  ;;  %vm1286_vm14 = vweird.f32 %v3423_v56  ;;  %v1290_v58 = vand.u32 2147483647, %v3423_v56  ;;  %2352 = vrcp.f32 %v3518_v47  ;;  %v1279_v12 = vmul.f32 %v2594_v8, %v1278_v11 }
 0x1fd   :  { %1692 = vperm.xlu1 %2190, %v1231_v44   ;;  %vm1288_vm15 = vmor %vm1286_vm14, %vm1287_vm8  ;;  %2354 = vrcp.f32 %v3521_v5  ;;  %v1300_v55 = vmul.f32 %v3484_v10, %v1299_v34  ;;  %v1330_v59 = vmul.f32 %v3525_v48, %v3480_v61  ;;  %v1293_v27 = vor.u32 1.1754944e-38, %v1292_v29 }
 0x1fe   :  { %v1289_v7 = vsel %vm1288_vm15, %v3464_v23, %v1285_v54  ;;  %v1316_v56 = vmul.f32 %v3490_v42, %v1315_v19  ;;  %vm1291_vm0 = vcmp.eq.f32.partialorder %v1290_v58, 8.507059e+37  ;;  %v3541_v17 = vperm.slane %v3504_v32, 1  ;;  %v4329_v54 = vld [vmem:[#allocation5_spill] sm:$0xff] }
 0x1ff   :  { %v1294_v8 = vsel %vm1291_vm0, %v1293_v27, %v1289_v7  ;;  %v1301_v39 = vadd.f32 %v3484_v10, %v1300_v55  ;;  %vm1303_vm11 = vweird.f32 %v3484_v10  ;;  %v1331_v57 = vsub.f32 1.0, %v1330_v59  ;;  %v4332_v55 = vld [vmem:[#allocation16_spill] sm:$0xff] }
 0x200   :  { %vm1302_vm13 = vweird.f32 %v3457_v14  ;;  %v1308_v62 = vand.u32 2147483648, %v3457_v14  ;;  %v1317_v44 = vadd.f32 %v3490_v42, %v1316_v56  ;;  %vm1319_vm12 = vweird.f32 %v3490_v42 }
 0x201   :  { %v1280_v43 = vmul.f32 %v2721_v1, %v1278_v11  ;;  %v1295_v3 = vmul.f32 %v2648_v18, %v1294_v8  ;;  %v1306_v25 = vand.u32 2147483647, %v3457_v14  ;;  %v1324_v9 = vand.u32 2147483648, %v3460_v2  ;;  %vm3559_vm9 = vmor %vm1302_vm13, %vm1303_vm11 }
 0x202   :  { %v3545_v23 = vpop.eup %2352  ;;  %2356 = vrcp.f32 %v3541_v17  ;;  %v1296_v31 = vmul.f32 %v2613_v36, %v1294_v8  ;;  %vm1318_vm8 = vweird.f32 %v3460_v2  ;;  %v1322_v37 = vand.u32 2147483647, %v3460_v2 }
 0x203   :  { %v3551_v41 = vpop.eup %2354  ;;  %v1305_v18 = vsel %vm3559_vm9, %v3484_v10, %v1301_v39  ;;  %vm3568_vm14 = vmor %vm1318_vm8, %vm1319_vm12  ;;  %v1332_v36 = vmul.f32 %v3525_v48, %v1331_v57  ;;  %v1346_v14 = vmul.f32 %v3545_v23, %v3518_v47  ;;  %v123_v10 = vpop.f32.mrf.mxu1  ;;  %vm1307_vm15 = vcmp.eq.f32.partialorder %v1306_v25, 8.507059e+37 }
 0x204   :  { %1695 = vperm.xlu0 %2189, %v1232_v24   ;;  %1698 = vperm.xlu2 %2188, %v1247_v16   ;;  %v1309_v24 = vor.u32 1.1754944e-38, %v1308_v62  ;;  %v1321_v2 = vsel %vm3568_vm14, %v3490_v42, %v1317_v44  ;;  %v1362_v26 = vmul.f32 %v3551_v41, %v3521_v5  ;;  %v3581_v16 = vperm.slane %v3504_v32, 2  ;;  %v4333_v44 = vld [vmem:[#allocation9_spill] sm:$0xff] }
 0x205   :  { %1701 = vperm.xlu1 %2190, %v1248_v60   ;;  %v1325_v21 = vor.u32 1.1754944e-38, %v1324_v9  ;;  %v95_v4 = vadd.f32 %v3280_v22, %v94_v38  ;;  %v3585_v60 = vperm.slane %v3504_v32, 3  ;;  %vm1323_vm0 = vcmp.eq.f32.partialorder %v1322_v37, 8.507059e+37  ;;  %v4334_v9 = vld [vmem:[#allocation6_spill] sm:$0xff] }
 0x206   :  { %v1310_v63 = vsel %vm1307_vm15, %v1309_v24, %v1305_v18  ;;  %vm1335_vm11 = vweird.f32 %v3525_v48  ;;  %v1333_v6 = vadd.f32 %v3525_v48, %v1332_v36  ;;  %v1347_v28 = vsub.f32 1.0, %v1346_v14 }
 0x207   :  { %v1326_v42 = vsel %vm1323_vm0, %v1325_v21, %v1321_v2  ;;  %v124_v51 = vadd.f32 %v123_v10, %v95_v4  ;;  %vm1334_vm13 = vweird.f32 %v3480_v61  ;;  %v1340_v52 = vand.u32 2147483648, %v3480_v61 }
 0x208   :  { %v3589_v46 = vpop.eup %2356  ;;  %v1363_v35 = vsub.f32 1.0, %v1362_v26  ;;  %v1311_v33 = vmul.f32 %v2749_v53, %v1310_v63  ;;  %v1312_v45 = vmul.f32 %v2668_v49, %v1310_v63  ;;  %v1338_v0 = vand.u32 2147483647, %v3480_v61  ;;  %vm3600_vm12 = vmor %vm1334_vm13, %vm1335_vm11 }
 0x209   :  { %v131_v11 = vmax.f32 %v124_v51, 0.0  ;;  %2358 = vrcp.f32 %v3581_v16  ;;  %v1327_v34 = vmul.f32 %v4329_v54, %v1326_v42  ;;  %v1337_v49 = vsel %vm3600_vm12, %v3525_v48, %v1333_v6 }
 0x20a   :  { %2360 = vrcp.f32 %v3585_v60  ;;  %v1348_v53 = vmul.f32 %v3545_v23, %v1347_v28  ;;  %v1378_v61 = vmul.f32 %v3589_v46, %v3541_v17  ;;  %v1341_v19 = vor.u32 1.1754944e-38, %v1340_v52  ;;  %v4339_v28 = vld [vmem:[#allocation19_spill] sm:$0xff] }
 0x20b   :  { %2169 = vmatmul.msk.f32.gmra.mxu2 %vm147_vm10, %v131_v11  ;;  %vm1339_vm9 = vcmp.eq.f32.partialorder %v1338_v0, 8.507059e+37  ;;  %2173 = vmatmul.msk.f32.gmra.mxu3 %vm147_vm10, %v131_v11  ;;  %v3616_v48 = vperm.slane %v3504_v32, 4  ;;  %v1328_v59 = vmul.f32 %v4332_v55, %v1326_v42  ;;  %vm1351_vm8 = vweird.f32 %v3545_v23  ;;  %v4340_v52 = vld [vmem:[#allocation11_spill] sm:$0xff] }
 0x20c   :  { %1704 = vperm.xlu0 %2189, %v1263_v20   ;;  %1707 = vperm.xlu2 %2188, %v1264_v50   ;;  %v1364_v20 = vmul.f32 %v3551_v41, %v1363_v35  ;;  %v97_v50 = vpop.f32.mrf.mxu0  ;;  %v1342_v7 = vsel %vm1339_vm9, %v1341_v19, %v1337_v49  ;;  %v1349_v27 = vadd.f32 %v3545_v23, %v1348_v53  ;;  %v1379_v56 = vsub.f32 1.0, %v1378_v61 }
 0x20d   :  { %1710 = vperm.xlu1 %2190, %v1279_v12   ;;  %v98_v58 = vadd.f32 %v3280_v22, %v97_v50  ;;  %v126_v12 = vpop.f32.mrf.mxu1  ;;  %v1356_v39 = vand.u32 2147483648, %v3518_v47  ;;  %vm1367_vm14 = vweird.f32 %v3551_v41  ;;  %vm1350_vm15 = vweird.f32 %v3518_v47 }
 0x20e   :  { %v1365_v57 = vadd.f32 %v3551_v41, %v1364_v20  ;;  %v1372_v25 = vand.u32 2147483648, %v3521_v5  ;;  %2362 = vrcp.f32 %v3616_v48  ;;  %vm3634_vm0 = vmor %vm1350_vm15, %vm1351_vm8  ;;  %vm1366_vm11 = vweird.f32 %v3521_v5 }
 0x20f   :  { %v3621_v8 = vpop.eup %2358  ;;  %v127_v22 = vadd.f32 %v126_v12, %v98_v58  ;;  %v1370_v37 = vand.u32 2147483647, %v3521_v5  ;;  %vm3645_vm13 = vmor %vm1366_vm11, %vm1367_vm14  ;;  %v1380_v1 = vmul.f32 %v3589_v46, %v1379_v56  ;;  %v1357_v5 = vor.u32 1.1754944e-38, %v1356_v39  ;;  %v4344_v56 = vld [vmem:[#allocation8_spill] sm:$0xff] }
 0x210   :  { %v3626_v62 = vpop.eup %2360  ;;  %v1394_v36 = vmul.f32 %v3621_v8, %v3581_v16  ;;  %v1369_v24 = vsel %vm3645_vm13, %v3551_v41, %v1365_v57  ;;  %v1373_v2 = vor.u32 1.1754944e-38, %v1372_v25  ;;  %v3660_v26 = vperm.slane %v3504_v32, 5 }
 0x211   :  { %v132_v14 = vmax.f32 %v127_v22, 0.0  ;;  %v3663_v38 = vperm.slane %v3504_v32, 6  ;;  %vm1371_vm9 = vcmp.eq.f32.partialorder %v1370_v37, 8.507059e+37  ;;  %v1381_v41 = vadd.f32 %v3589_v46, %v1380_v1 }
 0x212   :  { %v1374_v21 = vsel %vm1371_vm9, %v1373_v2, %v1369_v24  ;;  %vm1383_vm8 = vweird.f32 %v3589_v46  ;;  %v1395_v4 = vsub.f32 1.0, %v1394_v36  ;;  %v1388_v42 = vand.u32 2147483648, %v3541_v17 }
 0x213   :  { %2170 = vmatmul.msk.f32.gmra.mxu2 %vm147_vm10, %v132_v14  ;;  %2174 = vmatmul.msk.f32.gmra.mxu3 %vm147_vm10, %v132_v14  ;;  %vm1382_vm10 = vweird.f32 %v3541_v17  ;;  %2364 = vrcp.f32 %v3660_v26  ;;  %v3683_v49 = vperm.slane %v3504_v32, 7  ;;  %vm1398_vm11 = vweird.f32 %v3581_v16  ;;  %v4342_v32 = vld [vmem:[#allocation22_spill] sm:$0xff] }
 0x214   :  { %1713 = vperm.xlu0 %2189, %v1280_v43   ;;  %1716 = vperm.xlu2 %2188, %v1295_v3   ;;  %v1343_v43 = vmul.f32 %v4333_v44, %v1342_v7  ;;  %v1354_v3 = vand.u32 2147483647, %v3518_v47  ;;  %v1353_v47 = vsel %vm3634_vm0, %v3545_v23, %v1349_v27  ;;  %v1410_v23 = vmul.f32 %v3626_v62, %v3585_v60  ;;  %v3667_v63 = vpop.eup %2362  ;;  %vm1384_vm14 = vmor %vm1382_vm10, %vm1383_vm8 }
 0x215   :  { %1719 = vperm.xlu1 %2190, %v1296_v31   ;;  %v1344_v31 = vmul.f32 %v4334_v9, %v1342_v7  ;;  %2366 = vrcp.f32 %v3663_v38  ;;  %v1385_v11 = vsel %vm1384_vm14, %v3589_v46, %v1381_v41  ;;  %v1396_v54 = vmul.f32 %v3621_v8, %v1395_v4  ;;  %v4343_v7 = vld [vmem:[#allocation12_spill] sm:$0xff]  ;;  %v4351_v4 = vld [vmem:[#allocation10_spill] sm:$0xff] }
 0x216   :  { %vm1355_vm12 = vcmp.eq.f32.partialorder %v1354_v3, 8.507059e+37  ;;  %v1411_v6 = vsub.f32 1.0, %v1410_v23  ;;  %v1389_v29 = vor.u32 1.1754944e-38, %v1388_v42  ;;  %vm1399_vm0 = vweird.f32 %v3621_v8  ;;  %v4349_v23 = vld [vmem:[#allocation25_spill] sm:$0xff] }
 0x217   :  { %v1358_v10 = vsel %vm1355_vm12, %v1357_v5, %v1353_v47  ;;  %v1397_v61 = vadd.f32 %v3621_v8, %v1396_v54  ;;  %v1404_v20 = vand.u32 2147483648, %v3581_v16  ;;  %vm1415_vm13 = vweird.f32 %v3626_v62  ;;  %vm3701_vm12 = vmor %vm1398_vm11, %vm1399_vm0  ;;  %v4352_v54 = vld [vmem:[#allocation28_spill] sm:$0xff] }
 0x218   :  { %v1359_v51 = vmul.f32 %v4339_v28, %v1358_v10  ;;  %v1360_v35 = vmul.f32 %v4340_v52, %v1358_v10  ;;  %v1376_v12 = vmul.f32 %v4342_v32, %v1374_v21  ;;  %v1420_v27 = vand.u32 2147483648, %v3585_v60  ;;  %v4350_v10 = vld [vmem:[#allocation14_spill] sm:$0xff]  ;;  %v4354_v32 = vld [vmem:[#allocation13_spill] sm:$0xff] }
 0x219   :  { %v3687_v46 = vpop.eup %2364  ;;  %2368 = vrcp.f32 %v3683_v49  ;;  %vm1414_vm9 = vweird.f32 %v3585_v60  ;;  %v1418_v22 = vand.u32 2147483647, %v3585_v60  ;;  %v1405_v60 = vor.u32 1.1754944e-38, %v1404_v20 }
 0x21a   :  { %vm3714_vm8 = vmor %vm1414_vm9, %vm1415_vm13  ;;  %v1442_v25 = vmul.f32 %v3687_v46, %v3660_v26  ;;  %v1421_v13 = vor.u32 1.1754944e-38, %v1420_v27  ;;  %v1436_v5 = vand.u32 2147483648, %v3616_v48  ;;  %vm1430_vm0 = vweird.f32 %v3616_v48 }
 0x21b   :  { %v3693_v58 = vpop.eup %2366  ;;  %vm1419_vm14 = vcmp.eq.f32.partialorder %v1418_v22, 8.507059e+37  ;;  %v1434_v41 = vand.u32 2147483647, %v3616_v48  ;;  %v1450_v20 = vand.u32 2147483647, %v3660_v26 }
 0x21c   :  { %1722 = vperm.xlu0 %2189, %v1311_v33   ;;  %1725 = vperm.xlu2 %2188, %v1312_v45   ;;  %v1386_v33 = vand.u32 2147483647, %v3541_v17  ;;  %v4341_v45 = vld [vmem:[#allocation7_spill] sm:$0xff]  ;;  %v1412_v17 = vmul.f32 %v3626_v62, %v1411_v6  ;;  %v1443_v36 = vsub.f32 1.0, %v1442_v25  ;;  %v1437_v52 = vor.u32 1.1754944e-38, %v1436_v5 }
 0x21d   :  { %1728 = vperm.xlu1 %2190, %v1327_v34   ;;  %v1375_v0 = vmul.f32 %v4341_v45, %v1374_v21  ;;  %v1426_v34 = vmul.f32 %v3667_v63, %v3616_v48  ;;  %vm1435_vm13 = vcmp.eq.f32.partialorder %v1434_v41, 8.507059e+37  ;;  %vm1463_vm9 = vweird.f32 %v3693_v58  ;;  %v4359_v5 = vld [vmem:[#allocation15_spill] sm:$0xff] }
 0x21e   :  { %vm1387_vm15 = vcmp.eq.f32.partialorder %v1386_v33, 8.507059e+37  ;;  %v1413_v50 = vadd.f32 %v3626_v62, %v1412_v17  ;;  %v1444_v28 = vmul.f32 %v3687_v46, %v1443_v36  ;;  %v1482_v36 = vand.u32 2147483647, %v3683_v49 }
 0x21f   :  { %v1390_v53 = vsel %vm1387_vm15, %v1389_v29, %v1385_v11  ;;  %v1427_v19 = vsub.f32 1.0, %v1426_v34  ;;  %v3707_v44 = vpop.xlane.xlu1 %1035  ;;  %vm1431_vm15 = vweird.f32 %v3667_v63  ;;  %v3736_v14 = vpop.eup %2368  ;;  %v1452_v29 = vand.u32 2147483648, %v3660_v26 }
 0x220   :  { %v1391_v55 = vmul.f32 %v4343_v7, %v1390_v53  ;;  %v1392_v39 = vmul.f32 %v4344_v56, %v1390_v53  ;;  %v1417_v9 = vsel %vm3714_vm8, %v3626_v62, %v1413_v50  ;;  %v3729_v37 = vperm.slane %v3707_v44, 0  ;;  %vm1432_vm11 = vmor %vm1430_vm0, %vm1431_vm15 }
 0x221   :  { %v1428_v3 = vmul.f32 %v3667_v63, %v1427_v19  ;;  %v3733_v18 = vperm.slane %v3707_v44, 1  ;;  %v1422_v1 = vsel %vm1419_vm14, %v1421_v13, %v1417_v9  ;;  %v3754_v33 = vperm.slane %v3707_v44, 2  ;;  %v4357_v13 = vld [vmem:[#allocation31_spill] sm:$0xff] }
 0x222   :  { %2370 = vrcp.f32 %v3729_v37  ;;  %v1423_v42 = vmul.f32 %v4351_v4, %v1422_v1  ;;  %v1424_v34 = vmul.f32 %v4352_v54, %v1422_v1  ;;  %vm1446_vm8 = vweird.f32 %v3660_v26  ;;  %v4358_v1 = vld [vmem:[#allocation20_spill] sm:$0xff] }
 0x223   :  { %v1429_v62 = vadd.f32 %v3667_v63, %v1428_v3  ;;  %2372 = vrcp.f32 %v3733_v18  ;;  %v1468_v50 = vand.u32 2147483648, %v3663_v38  ;;  %vm1462_vm14 = vweird.f32 %v3663_v38 }
 0x224   :  { %1731 = vperm.xlu0 %2189, %v1328_v59   ;;  %1734 = vperm.xlu2 %2188, %v1343_v43   ;;  %v1402_v59 = vand.u32 2147483647, %v3581_v16  ;;  %v1401_v16 = vsel %vm3701_vm12, %v3621_v8, %v1397_v61  ;;  %v1458_v8 = vmul.f32 %v3693_v58, %v3663_v38  ;;  %vm1447_vm12 = vweird.f32 %v3687_v46  ;;  %v4353_v61 = vld [vmem:[#allocation17_spill] sm:$0xff]  ;;  %vm1464_vm15 = vmor %vm1462_vm14, %vm1463_vm9 }
 0x225   :  { %1737 = vperm.xlu1 %2190, %v1344_v31   ;;  %v1433_v6 = vsel %vm1432_vm11, %v3667_v63, %v1429_v62  ;;  %2374 = vrcp.f32 %v3754_v33  ;;  %v1453_v56 = vor.u32 1.1754944e-38, %v1452_v29  ;;  %vm1451_vm0 = vcmp.eq.f32.partialorder %v1450_v20, 8.507059e+37  ;;  %v4363_v29 = vld [vmem:[#allocation23_spill] sm:$0xff]  ;;  %v4364_v20 = vld [vmem:[#allocation18_spill] sm:$0xff] }
 0x226   :  { %vm1403_vm10 = vcmp.eq.f32.partialorder %v1402_v59, 8.507059e+37  ;;  %v1459_v24 = vsub.f32 1.0, %v1458_v8  ;;  %v1438_v45 = vsel %vm1435_vm13, %v1437_v52, %v1433_v6  ;;  %v1469_v22 = vor.u32 1.1754944e-38, %v1468_v50 }
 0x227   :  { %v1406_v47 = vsel %vm1403_vm10, %v1405_v60, %v1401_v16  ;;  %v1439_v19 = vmul.f32 %v4353_v61, %v1438_v45  ;;  %vm3772_vm10 = vmor %vm1446_vm8, %vm1447_vm12  ;;  %v3790_v16 = vperm.slane %v3707_v44, 3  ;;  %vm1479_vm13 = vweird.f32 %v3736_v14 }
 0x228   :  { %v1407_v2 = vmul.f32 %v4349_v23, %v1406_v47  ;;  %v1408_v21 = vmul.f32 %v4350_v10, %v1406_v47  ;;  %v1460_v48 = vmul.f32 %v3693_v58, %v1459_v24  ;;  %v3758_v11 = vpop.eup %2370  ;;  %v1484_v9 = vand.u32 2147483648, %v3683_v49 }
 0x229   :  { %v3764_v53 = vpop.eup %2372  ;;  %v1490_v27 = vmul.f32 %v3758_v11, %v3729_v37  ;;  %vm1478_vm12 = vweird.f32 %v3683_v49  ;;  %2376 = vrcp.f32 %v3790_v16  ;;  %vm1483_vm8 = vcmp.eq.f32.partialorder %v1482_v36, 8.507059e+37 }
 0x22a   :  { %v1461_v17 = vadd.f32 %v3693_v58, %v1460_v48  ;;  %v1506_v57 = vmul.f32 %v3764_v53, %v3733_v18  ;;  %vm3806_vm9 = vmor %vm1478_vm12, %vm1479_vm13  ;;  %v3823_v6 = vperm.slane %v3707_v44, 5  ;;  %vm1511_vm14 = vweird.f32 %v3764_v53 }
 0x22b   :  { %v3797_v60 = vpop.eup %2374  ;;  %v1498_v61 = vand.u32 2147483647, %v3729_v37  ;;  %v1530_v36 = vand.u32 2147483647, %v3754_v33 }
 0x22c   :  { %1740 = vperm.xlu0 %2189, %v1359_v51   ;;  %1743 = vperm.xlu2 %2188, %v1360_v35   ;;  %v1474_v51 = vmul.f32 %v3736_v14, %v3683_v49  ;;  %v1507_v8 = vsub.f32 1.0, %v1506_v57  ;;  %v1522_v49 = vmul.f32 %v3797_v60, %v3754_v33 }
 0x22d   :  { %1890 = vperm.xlu1 %2190, %v1375_v0   ;;  %v1445_v0 = vadd.f32 %v3687_v46, %v1444_v28  ;;  %vm1499_vm12 = vcmp.eq.f32.partialorder %v1498_v61, 8.507059e+37  ;;  %v1548_v61 = vand.u32 2147483648, %v3790_v16 }
 0x22e   :  { %v1475_v63 = vsub.f32 1.0, %v1474_v51  ;;  %v1508_v41 = vmul.f32 %v3764_v53, %v1507_v8  ;;  %v1523_v52 = vsub.f32 1.0, %v1522_v49  ;;  %v1532_v8 = vand.u32 2147483648, %v3754_v33 }
 0x22f   :  { %v1449_v26 = vsel %vm3772_vm10, %v3687_v46, %v1445_v0  ;;  %v3793_v46 = vperm.slane %v3707_v44, 4  ;;  %vm1495_vm10 = vweird.f32 %v3758_v11  ;;  %v3829_v48 = vpop.eup %2376 }
 0x230   :  { %v1476_v59 = vmul.f32 %v3736_v14, %v1475_v63  ;;  %v1454_v43 = vsel %vm1451_vm0, %v1453_v56, %v1449_v26  ;;  %v1500_v63 = vand.u32 2147483648, %v3729_v37  ;;  %v1509_v54 = vadd.f32 %v3764_v53, %v1508_v41 }
 0x231   :  { %v1455_v47 = vmul.f32 %v4357_v13, %v1454_v43  ;;  %v1456_v62 = vmul.f32 %v4358_v1, %v1454_v43  ;;  %2378 = vrcp.f32 %v3793_v46  ;;  %v1538_v26 = vmul.f32 %v3829_v48, %v3790_v16  ;;  %v4370_v1 = vld [vmem:[#allocation26_spill] sm:$0xff] }
 0x232   :  { %v1477_v25 = vadd.f32 %v3736_v14, %v1476_v59  ;;  %2380 = vrcp.f32 %v3823_v6  ;;  %v3860_v59 = vperm.slane %v3707_v44, 6  ;;  %v1533_v41 = vor.u32 1.1754944e-38, %v1532_v8 }
 0x234   :  { %1893 = vperm.xlu0 %2189, %v1376_v12   ;;  %1896 = vperm.xlu2 %2188, %v1391_v55   ;;  %v1440_v12 = vmul.f32 %v4354_v32, %v1438_v45  ;;  %v1466_v55 = vand.u32 2147483647, %v3663_v38  ;;  %v4362_v45 = vld [vmem:[#allocation34_spill] sm:$0xff]  ;;  %2382 = vrcp.f32 %v3860_v59 }
 0x235   :  { %1899 = vperm.xlu1 %2190, %v1392_v39   ;;  %v1465_v39 = vsel %vm1464_vm15, %v3693_v58, %v1461_v17  ;;  %v1491_v58 = vsub.f32 1.0, %v1490_v27  ;;  %vm1494_vm15 = vweird.f32 %v3729_v37  ;;  %v4374_v32 = vld [vmem:[#allocation38_spill] sm:$0xff] }
 0x236   :  { %v3726_v31 = vpop.permute.xlu2 %1650  ;;  %vm1467_vm11 = vcmp.eq.f32.partialorder %v1466_v55, 8.507059e+37  ;;  %vm3843_vm0 = vmor %vm1494_vm15, %vm1495_vm10  ;;  %v1524_v55 = vmul.f32 %v3797_v60, %v1523_v52  ;;  %vm1526_vm10 = vweird.f32 %v3754_v33  ;;  %vm1531_vm15 = vcmp.eq.f32.partialorder %v1530_v36, 8.507059e+37 }
 0x237   :  { %v1470_v3 = vsel %vm1467_vm11, %v1469_v22, %v1465_v39  ;;  %v1492_v10 = vmul.f32 %v3758_v11, %v1491_v58  ;;  %vm1510_vm11 = vweird.f32 %v3733_v18  ;;  %v3872_v22 = vperm.slane %v3707_v44, 7 }
 0x238   :  { %v1471_v24 = vmul.f32 %v4359_v5, %v1470_v3  ;;  %v1472_v0 = vmul.f32 %v4362_v45, %v1470_v3  ;;  %vm3852_vm13 = vmor %vm1510_vm11, %vm1511_vm14  ;;  %v1525_v58 = vadd.f32 %v3797_v60, %v1524_v55  ;;  %v4371_v5 = vld [vmem:[#allocation21_spill] sm:$0xff]  ;;  %vm1543_vm11 = vweird.f32 %v3829_v48 }
 0x239   :  { %v1493_v51 = vadd.f32 %v3758_v11, %v1492_v10  ;;  %v1513_v27 = vsel %vm3852_vm13, %v3764_v53, %v1509_v54  ;;  %v1539_v53 = vsub.f32 1.0, %v1538_v26  ;;  %2384 = vrcp.f32 %v3872_v22 }
 0x23b   :  { %v1497_v37 = vsel %vm3843_vm0, %v3758_v11, %v1493_v51  ;;  %vm1542_vm0 = vweird.f32 %v3790_v16 }
 0x23c   :  { %1902 = vperm.xlu0 %2189, %v1407_v2   ;;  %1905 = vperm.xlu2 %2188, %v1408_v21   ;;  %v1481_v2 = vsel %vm3806_vm9, %v3736_v14, %v1477_v25  ;;  %v1485_v21 = vor.u32 1.1754944e-38, %v1484_v9 }
 0x23d   :  { %1908 = vperm.xlu1 %2190, %v1423_v42  }
 0x23e   :  { %v3751_v35 = vpop.permute.xlu2 %1662  ;;  %v1486_v14 = vsel %vm1483_vm8, %v1485_v21, %v1481_v2  ;;  %vm1527_vm8 = vweird.f32 %v3797_v60  ;;  %v1540_v21 = vmul.f32 %v3829_v48, %v1539_v53  ;;  %v1549_v53 = vor.u32 1.1754944e-38, %v1548_v61  ;;  %v4384_v61 = vld [vmem:[#allocation32_spill] sm:$0xff] }
 0x23f   :  { %v1487_v17 = vmul.f32 %v4363_v29, %v1486_v14  ;;  %v1488_v50 = vmul.f32 %v4364_v20, %v1486_v14  ;;  %vm3887_vm14 = vmor %vm1526_vm10, %vm1527_vm8  ;;  %v1546_v29 = vand.u32 2147483647, %v3790_v16  ;;  %v1564_v20 = vand.u32 2147483648, %v3793_v46 }
 0x240   :  { %v1529_v49 = vsel %vm3887_vm14, %v3797_v60, %v1525_v58  ;;  %v141_v60 = vld [vmem:[%s4215_s4] sm:$0x3]  ;;  %v1541_v54 = vadd.f32 %v3829_v48, %v1540_v21 }
 0x241   :  { %v3922_v55 = vperm.slane %v141_v60, 0  ;;  %v3924_v26 = vperm.slane %v141_v60, 1  ;;  %vm3940_vm8 = vcmp.eq.f32.partialorder %v1546_v29, 8.507059e+37  ;;  %v4383_v29 = vld [vmem:[#allocation39_spill] sm:$0xff] }
 0x244   :  { %1911 = vperm.xlu0 %2189, %v1424_v34   ;;  %1914 = vperm.xlu2 %2188, %v1439_v19   ;;  %v3835_v34 = vpop.eup %2378  ;;  %v1516_v19 = vand.u32 2147483648, %v3733_v18 }
 0x245   :  { %1917 = vperm.xlu1 %2190, %v1440_v12   ;;  %v1514_v12 = vand.u32 2147483647, %v3733_v18  ;;  %v1501_v18 = vor.u32 1.1754944e-38, %v1500_v63  ;;  %v1554_v11 = vmul.f32 %v3835_v34, %v3793_v46  ;;  %v3878_v9 = vpop.eup %2380  ;;  %v1534_v63 = vsel %vm1531_vm15, %v1533_v41, %v1529_v49 }
 0x246   :  { %v3787_v38 = vpop.permute.xlu2 %1671  ;;  %v1517_v57 = vor.u32 1.1754944e-38, %v1516_v19  ;;  %v1570_v33 = vmul.f32 %v3878_v9, %v3823_v6  ;;  %v3903_v45 = vpop.eup %2382  ;;  %vm1559_vm13 = vweird.f32 %v3835_v34  ;;  %vm1575_vm15 = vweird.f32 %v3878_v9 }
 0x247   :  { %v1502_v3 = vsel %vm1499_vm12, %v1501_v18, %v1497_v37  ;;  %vm1515_vm9 = vcmp.eq.f32.partialorder %v1514_v12, 8.507059e+37  ;;  %v1555_v13 = vsub.f32 1.0, %v1554_v11  ;;  %v4375_v37 = vld [vmem:[#allocation29_spill] sm:$0xff]  ;;  %v4376_v18 = vld [vmem:[#allocation24_spill] sm:$0xff]  ;;  %vm3929_vm12 = vmor %vm1542_vm0, %vm1543_vm11  ;;  %vm1574_vm0 = vweird.f32 %v3823_v6 }
 0x248   :  { %v1518_v25 = vsel %vm1515_vm9, %v1517_v57, %v1513_v27  ;;  %v1535_v7 = vmul.f32 %v4375_v37, %v1534_v63  ;;  %v1536_v27 = vmul.f32 %v4376_v18, %v1534_v63  ;;  %vm1558_vm9 = vweird.f32 %v3793_v46  ;;  %vm3990_vm11 = vmor %vm1574_vm0, %vm1575_vm15 }
 0x249   :  { %v1556_v14 = vmul.f32 %v3835_v34, %v1555_v13  ;;  %v1520_v12 = vmul.f32 %v4374_v32, %v1518_v25  ;;  %v1562_v57 = vand.u32 2147483647, %v3793_v46  ;;  %vm3946_vm10 = vmor %vm1558_vm9, %vm1559_vm13  ;;  %v1565_v13 = vor.u32 1.1754944e-38, %v1564_v20  ;;  %v4385_v20 = vld [vmem:[#allocation27_spill] sm:$0xff] }
 0x24a   :  { %v1580_v63 = vand.u32 2147483648, %v3823_v6  ;;  %vm1591_vm9 = vweird.f32 %v3903_v45 }
 0x24b   :  { %v1557_v19 = vadd.f32 %v3835_v34, %v1556_v14  ;;  %vm1563_vm14 = vcmp.eq.f32.partialorder %v1562_v57, 8.507059e+37 }
 0x24c   :  { %1920 = vperm.xlu0 %2189, %v1455_v47   ;;  %1923 = vperm.xlu2 %2188, %v1456_v62   ;;  %v4369_v47 = vld [vmem:[#allocation36_spill] sm:$0xff]  ;;  %v1504_v62 = vmul.f32 %v4370_v1, %v1502_v3 }
 0x24d   :  { %1926 = vperm.xlu1 %2190, %v1471_v24   ;;  %v1503_v44 = vmul.f32 %v4369_v47, %v1502_v3  ;;  %v1519_v24 = vmul.f32 %v4371_v5, %v1518_v25  ;;  %v1586_v3 = vmul.f32 %v3903_v45, %v3860_v59  ;;  %v1545_v25 = vsel %vm3929_vm12, %v3829_v48, %v1541_v54 }
 0x24e   :  { %v3818_v4 = vpop.permute.xlu2 %1680  ;;  %v3820_v42 = vpop.permute.xlu0 %1653  ;;  %v1561_v8 = vsel %vm3946_vm10, %v3835_v34, %v1557_v19  ;;  %v1745_v34 = vperm.slane %v3726_v31, %v2773_v40  ;;  %v1550_v21 = vsel %vm3940_vm8, %v1549_v53, %v1545_v25  ;;  %vm1590_vm12 = vweird.f32 %v3860_v59  ;;  %v4388_v25 = vld [vmem:[#allocation40_spill] sm:$0xff] }
 0x24f   :  { %v3825_v28 = vpop.permute.xlu1 %1656  ;;  %v1566_v41 = vsel %vm1563_vm14, %v1565_v13, %v1561_v8  ;;  %v1746_v54 = vperm.slane %v3820_v42, %v2791_v15  ;;  %v1552_v19 = vmul.f32 %v4384_v61, %v1550_v21  ;;  %v1596_v13 = vand.u32 2147483648, %v3860_v59  ;;  %vm4036_vm10 = vmor %vm1590_vm12, %vm1591_vm9  ;;  %v4396_v42 = vld [vmem:[#allocation41_spill] sm:$0xff] }
 0x250   :  { %v177_v2 = vpop.f32.mrf.mxu2  ;;  %v206_v10 = vpop.f32.mrf.mxu3  ;;  %v1567_v32 = vmul.f32 %v4385_v20, %v1566_v41  ;;  %vm1606_vm14 = vweird.f32 %v3872_v22  ;;  %vm4398_vm12 = vcmask 130048  }
 0x251   :  { %v178_v36 = vadd.f32 %v177_v2, %v3922_v55  ;;  %v207_v5 = vadd.f32 %v206_v10, %v3924_v26  ;;  %v1578_v2 = vand.u32 2147483647, %v3823_v6  ;;  %v1751_v10 = vperm.slane %v3751_v35, %v2773_v40  ;;  %vm4399_vm9 = vmmov %vm4398_vm12 }
 0x252   :  { %v1755_v35 = vperm.slane %v3787_v38, %v2791_v15 }
 0x253   :  { %vm1579_vm13 = vcmp.eq.f32.partialorder %v1578_v2, 8.507059e+37 }
 0x254   :  { %1929 = vperm.xlu0 %2189, %v1472_v0   ;;  %1932 = vperm.xlu2 %2188, %v1487_v17   ;;  %v1571_v17 = vsub.f32 1.0, %v1570_v33  ;;  %v1587_v33 = vsub.f32 1.0, %v1586_v3 }
 0x255   :  { %1935 = vperm.xlu1 %2190, %v1488_v50   ;;  %v3918_v50 = vpop.eup %2384 }
 0x256   :  { %v3867_v56 = vpop.permute.xlu2 %1689  ;;  %v3869_v39 = vpop.permute.xlu0 %1659  ;;  %v1572_v46 = vmul.f32 %v3878_v9, %v1571_v17  ;;  %v1551_v17 = vmul.f32 %v4383_v29, %v1550_v21  ;;  %vm1607_vm8 = vweird.f32 %v3918_v50 }
 0x257   :  { %v3874_v43 = vpop.permute.xlu1 %1665  ;;  %v1749_v31 = vperm.slane %v3869_v39, %v2791_v15  ;;  %v1748_v39 = vperm.slane %v3825_v28, %v2773_v40  ;;  %vm4050_vm15 = vmor %vm1606_vm14, %vm1607_vm8 }
 0x258   :  { %v1573_v14 = vadd.f32 %v3878_v9, %v1572_v46  ;;  %v1752_v6 = vperm.slane %v3874_v43, %v2791_v15  ;;  %v1760_v43 = vperm.slane %v3818_v4, %v2773_v40  ;;  %v1594_v46 = vand.u32 2147483647, %v3860_v59  ;;  %vm4403_vm14 = vmmov %vm4399_vm9 }
 0x259   :  { %v1750_v28 = vsel %vm890_vm1, %v1749_v31, %v1748_v39 }
 0x25a   :  { %v1577_v38 = vsel %vm3990_vm11, %v3878_v9, %v1573_v14  ;;  %v1753_v4 = vsel %vm890_vm1, %v1752_v6, %v1751_v10  ;;  %vm1595_vm0 = vcmp.eq.f32.partialorder %v1594_v46, 8.507059e+37  ;;  %v4397_v6 = vld [vmem:[#allocation37_spill] sm:$0xff] }
 0x25c   :  { %1938 = vperm.xlu0 %2189, %v1503_v44   ;;  %1941 = vperm.xlu2 %2188, %v1504_v62   ;;  %v1602_v44 = vmul.f32 %v3918_v50, %v3872_v22 }
 0x25d   :  { %1944 = vperm.xlu1 %2190, %v1519_v24  }
 0x25e   :  { %v3899_v51 = vpop.permute.xlu2 %1698  ;;  %v3901_v52 = vpop.permute.xlu0 %1668  ;;  %v1603_v60 = vsub.f32 1.0, %v1602_v44 }
 0x25f   :  { %v3905_v0 = vpop.permute.xlu1 %1674  ;;  %v1754_v37 = vperm.slane %v3901_v52, %v2773_v40  ;;  %v1568_v52 = vmul.f32 %v4388_v25, %v1566_v41  ;;  %v1764_v41 = vperm.slane %v3867_v56, %v2791_v15  ;;  %v1597_v56 = vor.u32 1.1754944e-38, %v1596_v13 }
 0x260   :  { %v180_v48 = vpop.f32.mrf.mxu2  ;;  %v1604_v18 = vmul.f32 %v3918_v50, %v1603_v60  ;;  %v1757_v8 = vperm.slane %v3905_v0, %v2773_v40 }
 0x261   :  { %v209_v47 = vpop.f32.mrf.mxu3  ;;  %v181_v24 = vadd.f32 %v180_v48, %v3922_v55  ;;  %v1756_v48 = vsel %vm890_vm1, %v1755_v35, %v1754_v37 }
 0x262   :  { %v210_v23 = vadd.f32 %v209_v47, %v3924_v26  ;;  %v1605_v44 = vadd.f32 %v3918_v50, %v1604_v18 }
 0x263   :  { %1825 = vmatpush.msrb.mxu2 %v181_v24 }
 0x264   :  { %1947 = vperm.xlu0 %2189, %v1520_v12   ;;  %1950 = vperm.xlu2 %2188, %v1535_v7   ;;  %v1588_v12 = vmul.f32 %v3903_v45, %v1587_v33  ;;  %v1581_v7 = vor.u32 1.1754944e-38, %v1580_v63  ;;  %v1610_v33 = vand.u32 2147483647, %v3872_v22  ;;  %v1609_v31 = vsel %vm4050_vm15, %v3918_v50, %v1605_v44 }
 0x265   :  { %1953 = vperm.xlu1 %2190, %v1536_v27   ;;  %1848 = vmatpush.msrb.mxu3 %v210_v23  ;;  %v1747_v27 = vsel %vm890_vm1, %v1746_v54, %v1745_v34  ;;  %v1612_v23 = vand.u32 2147483648, %v3872_v22  ;;  %v4390_v34 = vld [vmem:[#allocation30_spill] sm:$0xff] }
 0x266   :  { %v3956_v1 = vpop.permute.xlu2 %1707  ;;  %v3958_v62 = vpop.permute.xlu0 %1677  ;;  %1826 = vmatpush.msrb.mxu2 %v178_v36  ;;  %v1582_v58 = vsel %vm1579_vm13, %v1581_v7, %v1577_v38  ;;  %v1589_v16 = vadd.f32 %v3903_v45, %v1588_v12  ;;  %v1793_v53 = vsel %vm985_vm2, %v1750_v28, %v1747_v27  ;;  %vm1611_vm11 = vcmp.eq.f32.partialorder %v1610_v33, 8.507059e+37  ;;  %v4400_v28 = vld [vmem:[#allocation33_spill] sm:$0xff] }
 0x267   :  { %v3966_v49 = vpop.permute.xlu1 %1683  ;;  %1849 = vmatpush.msrb.mxu3 %v207_v5  ;;  %v1758_v9 = vperm.slane %v3958_v62, %v2791_v15  ;;  %v4389_v5 = vld [vmem:[#allocation35_spill] sm:$0xff]  ;;  %v1794_v0 = vsel %vm987_vm3, %v1753_v4, %v1793_v53  ;;  %v1584_v21 = vmul.f32 %v4390_v34, %v1582_v58  ;;  %vm4395_vm13 = vcmask 1047559  }
 0x268   :  { %v1761_v47 = vperm.slane %v3966_v49, %v2791_v15  ;;  %v1583_v24 = vmul.f32 %v4389_v5, %v1582_v58  ;;  %v1795_v14 = vsel %vm989_vm4, %v1756_v48, %v1794_v0  ;;  %v1593_v2 = vsel %vm4036_vm10, %v3903_v45, %v1589_v16  ;;  %vm4401_vm8 = vmmov %vm4395_vm13 }
 0x269   :  { %v1759_v62 = vsel %vm890_vm1, %v1758_v9, %v1757_v8  ;;  %v1613_v45 = vor.u32 1.1754944e-38, %v1612_v23  ;;  %v1598_v61 = vsel %vm1595_vm0, %v1597_v56, %v1593_v2  ;;  %v1773_v46 = vperm.slane %v3956_v1, %v2791_v15  ;;  %vm4402_vm10 = vmmov %vm4399_vm9 }
 0x26a   :  { %v1762_v10 = vsel %vm890_vm1, %v1761_v47, %v1760_v43  ;;  %v1796_v22 = vsel %vm991_vm5, %v1759_v62, %v1795_v14  ;;  %v1599_v12 = vmul.f32 %v4396_v42, %v1598_v61  ;;  %v1600_v38 = vmul.f32 %v4397_v6, %v1598_v61  ;;  %vm4404_vm15 = vmmov %vm4401_vm8 }
 0x26b   :  { %v1614_v35 = vsel %vm1611_vm11, %v1613_v45, %v1609_v31  ;;  %vm4405_vm0 = vmmov %vm4399_vm9 }
 0x26c   :  { %1956 = vperm.xlu0 %2189, %v1551_v17   ;;  %1959 = vperm.xlu2 %2188, %v1552_v19   ;;  %v1797_v19 = vsel %vm993_vm6, %v1762_v10, %v1796_v22  ;;  %v1615_v37 = vmul.f32 %v4400_v28, %v1614_v35  ;;  %v1616_v43 = vmul.f32 %v3130_v30, %v1614_v35  ;;  %vm4406_vm11 = vmmov %vm4405_vm0 }
 0x26d   :  { %1962 = vperm.xlu1 %2190, %v1567_v32   ;;  %v1769_v30 = vperm.slane %v3899_v51, %v2773_v40 }
 0x26e   :  { %v1687_v11 = vpop.permute.xlu0 %1686  ;;  %v4011_v3 = vpop.permute.xlu2 %1716 }
 0x26f   :  { %v1693_v57 = vpop.permute.xlu1 %1692  ;;  %v1763_v36 = vperm.slane %v1687_v11, %v2773_v40  ;;  %v1778_v62 = vperm.slane %v4011_v3, %v2773_v40 }
 0x270   :  { %v1766_v54 = vperm.slane %v1693_v57, %v2773_v40 }
 0x271   :  { %v1765_v63 = vsel %vm890_vm1, %v1764_v41, %v1763_v36 }
 0x272   :  { %v1798_v50 = vsel %vm995_vm7, %v1765_v63, %v1797_v19 }
 0x274   :  { %1965 = vperm.xlu0 %2189, %v1568_v52   ;;  %1968 = vperm.xlu2 %2188, %v1583_v24  }
 0x275   :  { %1971 = vperm.xlu1 %2190, %v1584_v21  }
 0x276   :  { %v1696_v60 = vpop.permute.xlu0 %1695  ;;  %v1726_v39 = vpop.permute.xlu2 %1725 }
 0x277   :  { %v1702_v29 = vpop.permute.xlu1 %1701  ;;  %v1767_v17 = vperm.slane %v1696_v60, %v2791_v15  ;;  %v1782_v51 = vperm.slane %v1726_v39, %v2791_v15 }
 0x278   :  { %v1770_v4 = vperm.slane %v1702_v29, %v2791_v15 }
 0x279   :  { %v1768_v20 = vsel %vm890_vm1, %v1767_v17, %v1766_v54 }
 0x27a   :  { %v1799_v32 = vsel %vm4395_vm13, %v1768_v20, %v1798_v50  ;;  %v1771_v1 = vsel %vm890_vm1, %v1770_v4, %v1769_v30 }
 0x27b   :  { %2175 = vmatmul.msk.f32.vlgmr.msrb.gmra.mxu2 %vm4398_vm12, %v1799_v32  ;;  %2177 = vmatmul.msk.f32.vlgmr.msrb.gmra.mxu3 %vm4399_vm9, %v1799_v32 }
 0x27c   :  { %1974 = vperm.xlu0 %2189, %v1599_v12   ;;  %1977 = vperm.xlu2 %2188, %v1600_v38  }
 0x27d   :  { %1980 = vperm.xlu1 %2190, %v1615_v37  }
 0x27e   :  { %v1705_v7 = vpop.permute.xlu0 %1704  ;;  %v1735_v27 = vpop.permute.xlu2 %1734 }
 0x27f   :  { %v1711_v18 = vpop.permute.xlu1 %1710  ;;  %v1772_v58 = vperm.slane %v1705_v7, %v2773_v40  ;;  %v1787_v41 = vperm.slane %v1735_v27, %v2773_v40 }
 0x280   :  { %v1775_v53 = vperm.slane %v1711_v18, %v2773_v40 }
 0x281   :  { %v1774_v8 = vsel %vm890_vm1, %v1773_v46, %v1772_v58 }
 0x282   :  { %v1800_v23 = vsel %vm985_vm2, %v1774_v8, %v1771_v1 }
 0x284   :  { %1983 = vperm.xlu0 %2189, %v1616_v43  }
 0x286   :  { %v1714_v9 = vpop.permute.xlu0 %1713  ;;  %v1744_v57 = vpop.permute.xlu2 %1743 }
 0x287   :  { %v1720_v11 = vpop.permute.xlu1 %1719  ;;  %v1776_v16 = vperm.slane %v1714_v9, %v2791_v15  ;;  %v1791_v56 = vperm.slane %v1744_v57, %v2791_v15 }
 0x288   :  { %v1779_v13 = vperm.slane %v1720_v11, %v2791_v15 }
 0x289   :  { %v1777_v48 = vsel %vm890_vm1, %v1776_v16, %v1775_v53 }
 0x28a   :  { %v1780_v0 = vsel %vm890_vm1, %v1779_v13, %v1778_v62  ;;  %v1801_v34 = vsel %vm987_vm3, %v1777_v48, %v1800_v23 }
 0x28b   :  { %v1802_v14 = vsel %vm989_vm4, %v1780_v0, %v1801_v34 }
 0x28e   :  { %v1723_v25 = vpop.permute.xlu0 %1722  ;;  %v1897_v36 = vpop.permute.xlu2 %1896 }
 0x28f   :  { %v1729_v52 = vpop.permute.xlu1 %1728  ;;  %v1781_v47 = vperm.slane %v1723_v25, %v2773_v40  ;;  %v183_v17 = vpop.f32.mrf.mxu2  ;;  %v1988_v11 = vperm.slane %v1897_v36, %v2773_v40 }
 0x290   :  { %v1784_v21 = vperm.slane %v1729_v52, %v2773_v40  ;;  %v212_v61 = vpop.f32.mrf.mxu3  ;;  %v184_v32 = vadd.f32 %v183_v17, %v3922_v55 }
 0x291   :  { %v1783_v49 = vsel %vm890_vm1, %v1782_v51, %v1781_v47  ;;  %v213_v42 = vadd.f32 %v212_v61, %v3924_v26 }
 0x292   :  { %v1803_v2 = vsel %vm991_vm5, %v1783_v49, %v1802_v14 }
 0x296   :  { %v1732_v44 = vpop.permute.xlu0 %1731  ;;  %v1906_v60 = vpop.permute.xlu2 %1905 }
 0x297   :  { %v1738_v5 = vpop.permute.xlu1 %1737  ;;  %v1785_v24 = vperm.slane %v1732_v44, %v2791_v15  ;;  %v186_v39 = vpop.f32.mrf.mxu2  ;;  %v1992_v25 = vperm.slane %v1906_v60, %v2791_v15 }
 0x298   :  { %v1788_v3 = vperm.slane %v1738_v5, %v2791_v15  ;;  %v215_v20 = vpop.f32.mrf.mxu3  ;;  %v187_v12 = vadd.f32 %v186_v39, %v3922_v55 }
 0x299   :  { %v1786_v33 = vsel %vm890_vm1, %v1785_v24, %v1784_v21  ;;  %v216_v6 = vadd.f32 %v215_v20, %v3924_v26 }
 0x29a   :  { %v1789_v59 = vsel %vm890_vm1, %v1788_v3, %v1787_v41  ;;  %v1804_v22 = vsel %vm993_vm6, %v1786_v33, %v1803_v2  ;;  %2065 = vmatpush.msra.mxu2 %v187_v12 }
 0x29b   :  { %v1805_v54 = vsel %vm995_vm7, %v1789_v59, %v1804_v22  ;;  %2088 = vmatpush.msra.mxu3 %v216_v6 }
 0x29c   :  { %2066 = vmatpush.msra.mxu2 %v184_v32 }
 0x29d   :  { %2089 = vmatpush.msra.mxu3 %v213_v42 }
 0x29e   :  { %v1741_v10 = vpop.permute.xlu0 %1740  ;;  %v1915_v50 = vpop.permute.xlu2 %1914 }
 0x29f   :  { %v1891_v31 = vpop.permute.xlu1 %1890  ;;  %v1790_v63 = vperm.slane %v1741_v10, %v2773_v40  ;;  %v1997_v48 = vperm.slane %v1915_v50, %v2773_v40 }
 0x2a0   :  { %v1985_v55 = vperm.slane %v1891_v31, %v2773_v40 }
 0x2a1   :  { %v1792_v45 = vsel %vm890_vm1, %v1791_v56, %v1790_v63 }
 0x2a2   :  { %v1806_v29 = vsel %vm4401_vm8, %v1792_v45, %v1805_v54 }
 0x2a3   :  { %2176 = vmatmul.msk.f32.gmra.mxu2 %vm4402_vm10, %v1806_v29  ;;  %2178 = vmatmul.msk.f32.gmra.mxu3 %vm4403_vm14, %v1806_v29 }
 0x2a6   :  { %v1894_v19 = vpop.permute.xlu0 %1893  ;;  %v1924_v37 = vpop.permute.xlu2 %1923 }
 0x2a7   :  { %v1900_v35 = vpop.permute.xlu1 %1899  ;;  %v1986_v27 = vperm.slane %v1894_v19, %v2791_v15  ;;  %v2001_v44 = vperm.slane %v1924_v37, %v2791_v15 }
 0x2a8   :  { %v1989_v43 = vperm.slane %v1900_v35, %v2791_v15 }
 0x2a9   :  { %v1987_v46 = vsel %vm890_vm1, %v1986_v27, %v1985_v55 }
 0x2aa   :  { %v1990_v16 = vsel %vm890_vm1, %v1989_v43, %v1988_v11 }
 0x2ab   :  { %v2033_v47 = vsel %vm985_vm2, %v1990_v16, %v1987_v46 }
 0x2ae   :  { %v1903_v38 = vpop.permute.xlu0 %1902  ;;  %v1933_v52 = vpop.permute.xlu2 %1932 }
 0x2af   :  { %v1909_v28 = vpop.permute.xlu1 %1908  ;;  %v1991_v9 = vperm.slane %v1903_v38, %v2773_v40  ;;  %v2006_v34 = vperm.slane %v1933_v52, %v2773_v40 }
 0x2b0   :  { %v1994_v4 = vperm.slane %v1909_v28, %v2773_v40 }
 0x2b1   :  { %v1993_v53 = vsel %vm890_vm1, %v1992_v25, %v1991_v9 }
 0x2b2   :  { %v2034_v62 = vsel %vm987_vm3, %v1993_v53, %v2033_v47  ;;  %v2097_v47 = vld [vmem:[%s4216_s5] sm:$0x3] }
 0x2b6   :  { %v1912_v7 = vpop.permute.xlu0 %1911  ;;  %v1942_v3 = vpop.permute.xlu2 %1941 }
 0x2b7   :  { %v1918_v18 = vpop.permute.xlu1 %1917  ;;  %v1995_v26 = vperm.slane %v1912_v7, %v2791_v15  ;;  %v2010_v50 = vperm.slane %v1942_v3, %v2791_v15  ;;  %v2394_v3 = vld [vmem:[%s4211_s0] sm:$0xff] }
 0x2b8   :  { %v1998_v30 = vperm.slane %v1918_v18, %v2791_v15 }
 0x2b9   :  { %v1996_v8 = vsel %vm890_vm1, %v1995_v26, %v1994_v4 }
 0x2ba   :  { %v1999_v1 = vsel %vm890_vm1, %v1998_v30, %v1997_v48  ;;  %v2035_v36 = vsel %vm989_vm4, %v1996_v8, %v2034_v62 }
 0x2bb   :  { %v2036_v21 = vsel %vm991_vm5, %v1999_v1, %v2035_v36  ;;  %v2111_v36 = vld [vmem:[%s4217_s6] sm:$0x3] }
 0x2be   :  { %v1921_v57 = vpop.permute.xlu0 %1920  ;;  %v1951_v56 = vpop.permute.xlu2 %1950 }
 0x2bf   :  { %v1927_v58 = vpop.permute.xlu1 %1926  ;;  %v2000_v13 = vperm.slane %v1921_v57, %v2773_v40  ;;  %v2015_v12 = vperm.slane %v1951_v56, %v2773_v40 }
 0x2c0   :  { %v2003_v51 = vperm.slane %v1927_v58, %v2773_v40 }
 0x2c1   :  { %v2002_v5 = vsel %vm890_vm1, %v2001_v44, %v2000_v13 }
 0x2c2   :  { %v2037_v33 = vsel %vm993_vm6, %v2002_v5, %v2036_v21  ;;  %v2113_v5 = vperm.slane %v2111_v36, 0 }
 0x2c6   :  { %v1930_v24 = vpop.permute.xlu0 %1929  ;;  %v1960_v60 = vpop.permute.xlu2 %1959 }
 0x2c7   :  { %v1936_v23 = vpop.permute.xlu1 %1935  ;;  %v2004_v0 = vperm.slane %v1930_v24, %v2791_v15  ;;  %v2019_v28 = vperm.slane %v1960_v60, %v2791_v15  ;;  %v2114_v24 = vperm.slane %v2111_v36, 1 }
 0x2c8   :  { %v2007_v49 = vperm.slane %v1936_v23, %v2791_v15 }
 0x2c9   :  { %v2005_v41 = vsel %vm890_vm1, %v2004_v0, %v2003_v51 }
 0x2ca   :  { %v2008_v14 = vsel %vm890_vm1, %v2007_v49, %v2006_v34  ;;  %v2038_v2 = vsel %vm995_vm7, %v2005_v41, %v2037_v33  ;;  %v2395_v41 = vld [vmem:[%s4211_s0 + $0x8] sm:$0xff] }
 0x2cb   :  { %v2039_v59 = vsel %vm4404_vm15, %v2008_v14, %v2038_v2 }
 0x2cc   :  { %2179 = vmatmul.msk.f32.vlgmr.msra.gmra.mxu2 %vm4405_vm0, %v2039_v59  ;;  %2181 = vmatmul.msk.f32.vlgmr.msra.gmra.mxu3 %vm4406_vm11, %v2039_v59 }
 0x2ce   :  { %v1939_v10 = vpop.permute.xlu0 %1938  ;;  %v1969_v17 = vpop.permute.xlu2 %1968 }
 0x2cf   :  { %v1945_v22 = vpop.permute.xlu1 %1944  ;;  %v2009_v39 = vperm.slane %v1939_v10, %v2773_v40  ;;  %v2024_v57 = vperm.slane %v1969_v17, %v2773_v40 }
 0x2d0   :  { %v2012_v35 = vperm.slane %v1945_v22, %v2773_v40 }
 0x2d1   :  { %v2011_v37 = vsel %vm890_vm1, %v2010_v50, %v2009_v39 }
 0x2d6   :  { %v1948_v31 = vpop.permute.xlu0 %1947  ;;  %v1978_v27 = vpop.permute.xlu2 %1977 }
 0x2d7   :  { %v1954_v63 = vpop.permute.xlu1 %1953  ;;  %v2013_v61 = vperm.slane %v1948_v31, %v2791_v15  ;;  %v2028_v52 = vperm.slane %v1978_v27, %v2791_v15 }
 0x2d8   :  { %v2016_v20 = vperm.slane %v1954_v63, %v2791_v15 }
 0x2d9   :  { %v2014_v32 = vsel %vm890_vm1, %v2013_v61, %v2012_v35 }
 0x2da   :  { %v2017_v7 = vsel %vm890_vm1, %v2016_v20, %v2015_v12  ;;  %v2040_v18 = vsel %vm985_vm2, %v2014_v32, %v2011_v37  ;;  %vm4407_vm2 = vmmov %vm4401_vm8  ;;  %v2398_v12 = vld [vmem:[%s4211_s0 + $0x20] sm:$0xff] }
 0x2db   :  { %v2041_v25 = vsel %vm987_vm3, %v2017_v7, %v2040_v18  ;;  %vm4408_vm3 = vmmov %vm4405_vm0 }
 0x2de   :  { %v1957_v45 = vpop.permute.xlu0 %1956 }
 0x2df   :  { %v1963_v54 = vpop.permute.xlu1 %1962  ;;  %v2018_v42 = vperm.slane %v1957_v45, %v2773_v40  ;;  %v2396_v45 = vld [vmem:[%s4211_s0 + $0x10] sm:$0xff] }
 0x2e0   :  { %v2021_v43 = vperm.slane %v1963_v54, %v2773_v40 }
 0x2e1   :  { %v2020_v9 = vsel %vm890_vm1, %v2019_v28, %v2018_v42 }
 0x2e2   :  { %v2042_v58 = vsel %vm989_vm4, %v2020_v9, %v2041_v25  ;;  %vm4409_vm4 = vmmov %vm4405_vm0  ;;  %v2401_v25 = vld [vmem:[%s4211_s0 + $0x38] sm:$0xff] }
 0x2e6   :  { %v1966_v29 = vpop.permute.xlu0 %1965 }
 0x2e7   :  { %v1972_v19 = vpop.permute.xlu1 %1971  ;;  %v2022_v6 = vperm.slane %v1966_v29, %v2791_v15  ;;  %v2397_v29 = vld [vmem:[%s4211_s0 + $0x18] sm:$0xff] }
 0x2e8   :  { %v2025_v11 = vperm.slane %v1972_v19, %v2791_v15 }
 0x2e9   :  { %v2023_v55 = vsel %vm890_vm1, %v2022_v6, %v2021_v43 }
 0x2ea   :  { %v2026_v46 = vsel %vm890_vm1, %v2025_v11, %v2024_v57  ;;  %v2043_v4 = vsel %vm991_vm5, %v2023_v55, %v2042_v58 }
 0x2eb   :  { %v2044_v48 = vsel %vm993_vm6, %v2026_v46, %v2043_v4 }
 0x2ee   :  { %v1975_v38 = vpop.permute.xlu0 %1974 }
 0x2ef   :  { %v2027_v26 = vperm.slane %v1975_v38, %v2773_v40  ;;  %v1981_v16 = vpop.permute.xlu1 %1980  ;;  %v2399_v38 = vld [vmem:[%s4211_s0 + $0x28] sm:$0xff] }
 0x2f0   :  { %v2030_v8 = vperm.slane %v1981_v16, %v2773_v40  ;;  %v2099_v40 = vperm.slane %v2097_v47, 0 }
 0x2f1   :  { %v2029_v53 = vsel %vm890_vm1, %v2028_v52, %v2027_v26  ;;  %v2400_v26 = vld [vmem:[%s4211_s0 + $0x30] sm:$0xff] }
 0x2f2   :  { %v2045_v62 = vsel %vm995_vm7, %v2029_v53, %v2044_v48 }
 0x2f6   :  { %v1984_v30 = vpop.permute.xlu0 %1983 }
 0x2f7   :  { %v2031_v13 = vperm.slane %v1984_v30, %v2791_v15  ;;  %v2100_v15 = vperm.slane %v2097_v47, 1 }
 0x2f9   :  { %v2032_v44 = vsel %vm890_vm1, %v2031_v13, %v2030_v8 }
 0x2fa   :  { %v2046_v1 = vsel %vm4407_vm2, %v2032_v44, %v2045_v62 }
 0x2fb   :  { %2180 = vmatmul.msk.f32.gmra.mxu2 %vm4408_vm3, %v2046_v1  ;;  %2182 = vmatmul.msk.f32.gmra.mxu3 %vm4409_vm4, %v2046_v1 }
 0x2fe   :  { %v1828_v51 = vpop.f32.mrf.mxu2  ;;  %v1851_v23 = vpop.f32.mrf.mxu3 }
 0x2ff   :  { %v2103_v0 = vmul.f32 %v2099_v40, %v1828_v51  ;;  %v2104_v34 = vmul.f32 %v2100_v15, %v1851_v23 }
 0x301   :  { %v2117_v21 = vadd.f32 %v2113_v5, %v2103_v0  ;;  %v2118_v49 = vadd.f32 %v2114_v24, %v2104_v34 }
 0x303   :  { %v2125_v33 = vadd.f32 %v2394_v3, %v2117_v21  ;;  %v2126_v14 = vadd.f32 %v2395_v41, %v2118_v49 }
 0x305   :  { %v2133_v2 = vmax.f32 %v2125_v33, 0.0  ;;  %v2134_v59 = vmax.f32 %v2126_v14, 0.0 }
 0x307   :  { %2141 = vst [vmem:[#allocation2] sm:$0xff] %v2133_v2 }
 0x308   :  { %2142 = vst [vmem:[#allocation2 + $0x8] sm:$0xff] %v2134_v59 }
 0x326   :  { %v1831_v10 = vpop.f32.mrf.mxu2  ;;  %v1854_v22 = vpop.f32.mrf.mxu3 }
 0x327   :  { %v2105_v56 = vmul.f32 %v2099_v40, %v1831_v10  ;;  %v2106_v31 = vmul.f32 %v2100_v15, %v1854_v22 }
 0x329   :  { %v2119_v63 = vadd.f32 %v2113_v5, %v2105_v56  ;;  %v2120_v60 = vadd.f32 %v2114_v24, %v2106_v31 }
 0x32b   :  { %v2127_v54 = vadd.f32 %v2396_v45, %v2119_v63  ;;  %v2128_v17 = vadd.f32 %v2397_v29, %v2120_v60 }
 0x32d   :  { %v2135_v61 = vmax.f32 %v2127_v54, 0.0  ;;  %v2136_v19 = vmax.f32 %v2128_v17, 0.0 }
 0x32f   :  { %2143 = vst [vmem:[#allocation2 + $0x10] sm:$0xff] %v2135_v61 }
 0x330   :  { %2144 = vst [vmem:[#allocation2 + $0x18] sm:$0xff] %v2136_v19 }
 0x34f   :  { %v2068_v35 = vpop.f32.mrf.mxu2  ;;  %v2091_v39 = vpop.f32.mrf.mxu3 }
 0x350   :  { %v2107_v20 = vmul.f32 %v2099_v40, %v2068_v35  ;;  %v2108_v50 = vmul.f32 %v2100_v15, %v2091_v39 }
 0x352   :  { %v2121_v32 = vadd.f32 %v2113_v5, %v2107_v20  ;;  %v2122_v42 = vadd.f32 %v2114_v24, %v2108_v50 }
 0x354   :  { %v2129_v6 = vadd.f32 %v2398_v12, %v2121_v32  ;;  %v2130_v28 = vadd.f32 %v2399_v38, %v2122_v42 }
 0x356   :  { %v2137_v37 = vmax.f32 %v2129_v6, 0.0  ;;  %v2138_v7 = vmax.f32 %v2130_v28, 0.0 }
 0x358   :  { %2145 = vst [vmem:[#allocation2 + $0x20] sm:$0xff] %v2137_v37 }
 0x359   :  { %2146 = vst [vmem:[#allocation2 + $0x28] sm:$0xff] %v2138_v7 }
 0x37e   :  { %v2071_v18 = vpop.f32.mrf.mxu2  ;;  %v2094_v43 = vpop.f32.mrf.mxu3 }
 0x37f   :  { %v2109_v27 = vmul.f32 %v2099_v40, %v2071_v18  ;;  %v2110_v9 = vmul.f32 %v2100_v15, %v2094_v43 }
 0x381   :  { %v2123_v11 = vadd.f32 %v2113_v5, %v2109_v27  ;;  %v2124_v55 = vadd.f32 %v2114_v24, %v2110_v9 }
 0x383   :  { %v2131_v57 = vadd.f32 %v2400_v26, %v2123_v11  ;;  %v2132_v52 = vadd.f32 %v2401_v25, %v2124_v55 }
 0x385   :  { %v2139_v58 = vmax.f32 %v2131_v57, 0.0  ;;  %v2140_v16 = vmax.f32 %v2132_v52, 0.0 }
 0x387   :  { %2147 = vst [vmem:[#allocation2 + $0x30] sm:$0xff] %v2139_v58 }
 0x388   :  { %2148 = vst [vmem:[#allocation2 + $0x38] sm:$0xff] %v2140_v16 }
 0x389   :  { %2161 = dma.vmem_to_hbm [thread:$0]  %s2154_s12, 1024, %s2156_s14, [#allocation3], %s2431_s19, %s2431_s19, %s2432_s20  }
 0x38a   :  { %2426 = dma.done.wait [#allocation3], 1024  }
 0x38b   :  { %2427 = vsyncadd [#allocation3], 4294966272 }
 0x38c   :  { %2166 = vsyncpa [#allocation3], 1 }

</bundles_post_ra>
